<compile_context>
chip_gen: v7x
topology: tpu7x:2x2x1
jax: 0.10.0
libtpu: 0.0.40
codegen_flags: <defaults>
</compile_context>

<pallas_src>
import numpy as np
import jax
import jax.numpy as jnp
from jax import lax
from jax.experimental import pallas as pl
from jax.experimental.pallas import tpu as pltpu


_INV_SQRT2 = 0.7071067811865476  # 1/sqrt(2) for exact (erf) GELU, torch.nn.GELU default.


# ----------------------------- Pallas kernel -------------------------------

def _mlp_kernel(x_ref, w1_ref, b1_ref, w2_ref, b2_ref, o_ref, acc_ref):
    """Fused MLP: o = GELU(x @ W1 + b1) @ W2 + b2, tiled over (rows, hidden)."""
    k = pl.program_id(1)

    @pl.when(k == 0)
    def _():
        acc_ref[...] = jnp.zeros_like(acc_ref)

    # bf16 operands, f32 accumulation on the MXU.
    x = x_ref[...].astype(jnp.bfloat16)                            # (tm, C)
    h = jnp.dot(x, w1_ref[...],                                    # (tm, tk) f32
                preferred_element_type=jnp.float32) + b1_ref[...]
    # Exact (erf-based) GELU, matching torch.nn.GELU default.
    h = 0.5 * h * (1.0 + lax.erf(h * _INV_SQRT2))
    acc_ref[...] += jnp.dot(h.astype(jnp.bfloat16), w2_ref[...],
                            preferred_element_type=jnp.float32)    # (tm, C_out) f32

    @pl.when(k == pl.num_programs(1) - 1)
    def _():
        o_ref[...] = (acc_ref[...] + b2_ref[...]).astype(o_ref.dtype)


# ----------------------------- tiling helpers ------------------------------

def _row_tile(R, max_tile=512):
    """Largest multiple-of-8 divisor of R <= max_tile that keeps the parallel grid >= 2."""
    best = None
    t = 8
    while t <= min(max_tile, R):
        if R % t == 0 and (R // t) >= 2:
            best = t
        t += 8
    return best if best is not None else R


def _hidden_tile(Hd, max_tile=512):
    """Largest multiple-of-128 divisor of Hd <= max_tile (else the full hidden dim)."""
    best = None
    t = 128
    while t <= min(max_tile, Hd):
        if Hd % t == 0:
            best = t
        t += 128
    return best if best is not None else Hd


# ----------------------------- Pallas wrapper ------------------------------

def mlp_pallas(x, w1, b1, w2, b2):
    """x: (..., C); w1: (C, Hd); b1: (Hd,); w2: (Hd, C_out); b2: (C_out,)."""
    orig_shape = x.shape
    C = orig_shape[-1]
    Hd = w1.shape[1]
    C_out = w2.shape[1]
    x2d = x.reshape(-1, C)
    R = x2d.shape[0]

    # Pad rows up to a multiple of 8 so the sublane tiling constraint is met and the
    # row axis can be tiled (padding is only triggered for awkward row counts).
    R_pad = ((R + 7) // 8) * 8 if R % 8 != 0 else R
    if R_pad != R:
        x2d = jnp.pad(x2d, ((0, R_pad - R), (0, 0)))

    tm = _row_tile(R_pad)
    tk = _hidden_tile(Hd)

    # Weights in bf16 (halves HBM traffic + VMEM, MXU-native); biases stay f32.
    w1b = w1.astype(jnp.bfloat16)
    w2b = w2.astype(jnp.bfloat16)
    b1r = b1.reshape(1, Hd).astype(jnp.float32)
    b2r = b2.reshape(1, C_out).astype(jnp.float32)

    out = pl.pallas_call(
        _mlp_kernel,
        out_shape=jax.ShapeDtypeStruct((R_pad, C_out), x.dtype),
        grid=(R_pad // tm, Hd // tk),
        in_specs=[
            pl.BlockSpec((tm, C), lambda i, k: (i, 0)),      # x: constant over k -> fetched once per i
            pl.BlockSpec((C, tk), lambda i, k: (0, k)),      # W1 hidden-tile
            pl.BlockSpec((1, tk), lambda i, k: (0, k)),      # b1 hidden-tile
            pl.BlockSpec((tk, C_out), lambda i, k: (k, 0)),  # W2 hidden-tile
            pl.BlockSpec((1, C_out), lambda i, k: (0, 0)),   # b2
        ],
        out_specs=pl.BlockSpec((tm, C_out), lambda i, k: (i, 0)),
        scratch_shapes=[pltpu.VMEM((tm, C_out), jnp.float32)],
        compiler_params=pltpu.CompilerParams(
            dimension_semantics=("parallel", "arbitrary"),
            vmem_limit_bytes=64 * 1024 * 1024,
        ),
    )(x2d, w1b, b1r, w2b, b2r)

    if R_pad != R:
        out = out[:R]
    return out.reshape(orig_shape[:-1] + (C_out,))


# ------------------------- references (pure JAX) ---------------------------

def ref_mlp_bf16(x, w1, b1, w2, b2):
    """Matches kernel numerics: bf16 matmul operands, f32 accumulation."""
    C = x.shape[-1]
    x2d = x.reshape(-1, C).astype(jnp.bfloat16)
    h = jnp.dot(x2d, w1.astype(jnp.bfloat16),
                preferred_element_type=jnp.float32) + b1[None, :]
    h = 0.5 * h * (1.0 + lax.erf(h * _INV_SQRT2))
    y = jnp.dot(h.astype(jnp.bfloat16), w2.astype(jnp.bfloat16),
                preferred_element_type=jnp.float32) + b2[None, :]
    return y.reshape(x.shape[:-1] + (w2.shape[1],))


def ref_mlp_fp32(x, w1, b1, w2, b2):
    h = x @ w1 + b1
    h = 0.5 * h * (1.0 + lax.erf(h * _INV_SQRT2))
    return h @ w2 + b2


# --------------------------------- main ------------------------------------

if __name__ == "__main__":
    # Small, lane-dense config: tokens = B*S = 256 rows, C = 128, hidden = 4*C = 512.
    B, S, C = 2, 128, 128
    mlp_ratio = 4.0
    Hd = int(C * mlp_ratio)

    key = jax.random.PRNGKey(0)
    kx, k1, k2, k3, k4 = jax.random.split(key, 5)
    x = jax.random.normal(kx, (B, S, C), jnp.float32)
    w1 = jax.random.normal(k1, (C, Hd), jnp.float32) * 0.02
    b1 = jax.random.normal(k2, (Hd,), jnp.float32) * 0.02
    w2 = jax.random.normal(k3, (Hd, C), jnp.float32) * 0.02
    b2 = jax.random.normal(k4, (C,), jnp.float32) * 0.02

    fwd = jax.jit(mlp_pallas)
    out = jax.block_until_ready(fwd(x, w1, b1, w2, b2))

    ref_b = jax.block_until_ready(jax.jit(ref_mlp_bf16)(x, w1, b1, w2, b2))
    ref_f = jax.block_until_ready(jax.jit(ref_mlp_fp32)(x, w1, b1, w2, b2))

    assert out.shape == (B, S, C)
    # Tight check against the numerics-matched (bf16 operand / f32 accum) reference.
    np.testing.assert_allclose(np.asarray(out), np.asarray(ref_b), atol=1e-4, rtol=1e-4)
    # Loose sanity check against the pure-fp32 reference (bf16 operand rounding only).
    np.testing.assert_allclose(np.asarray(out), np.asarray(ref_f), atol=2e-2, rtol=2e-2)
    print("KERNEL_OK")
</pallas_src>

<mosaic_0001>
module attributes {stable_mosaic.version = 11 : i64} {
  func.func @_mlp_kernel(%arg0: i32, %arg1: i32, %arg2: memref<128x128xf32, #tpu.memory_space<vmem>>, %arg3: memref<128x512xbf16, #tpu.memory_space<vmem>>, %arg4: memref<1x512xf32, #tpu.memory_space<vmem>>, %arg5: memref<512x128xbf16, #tpu.memory_space<vmem>>, %arg6: memref<1x128xf32, #tpu.memory_space<vmem>>, %arg7: memref<128x128xf32, #tpu.memory_space<vmem>>, %arg8: memref<128x128xf32, #tpu.memory_space<vmem>>) attributes {dimension_semantics = [#tpu.dimension_semantics<parallel>, #tpu.dimension_semantics<arbitrary>], iteration_bounds = array<i64: 2, 1>, scalar_prefetch = 0 : i64, scratch_operands = 1 : i64, tpu.core_type = #tpu.core_type<tc>, window_params = [{transform_indices = @transform_0, window_bounds = array<i64: 128, 128>}, {transform_indices = @transform_1, window_bounds = array<i64: 128, 512>}, {transform_indices = @transform_2, window_bounds = array<i64: 1, 512>}, {transform_indices = @transform_3, window_bounds = array<i64: 512, 128>}, {pipeline_mode = #tpu.pipeline_mode<synchronous>, transform_indices = @transform_4, window_bounds = array<i64: 1, 128>}, {transform_indices = @transform_5, window_bounds = array<i64: 128, 128>}]} {
    %c0_i32 = arith.constant 0 : i32
    %0 = arith.cmpi eq, %arg1, %c0_i32 : i32
    %1 = arith.extui %0 : i1 to i32
    %c0_i32_0 = arith.constant 0 : i32
    %2 = arith.cmpi ne, %1, %c0_i32_0 : i32
    scf.if %2 {
      %cst_18 = arith.constant 0.000000e+00 : f32
      %27 = vector.broadcast %cst_18 : f32 to vector<128x128xf32>
      %c0_19 = arith.constant 0 : index
      %c0_20 = arith.constant 0 : index
      %28 = vector.load %arg8[%c0_19, %c0_20] : memref<128x128xf32, #tpu.memory_space<vmem>>, vector<128x128xf32>
      tpu.vector_store %arg8[%c0_19, %c0_20], %27 {strides = array<i32>} : memref<128x128xf32, #tpu.memory_space<vmem>>, vector<128x128xf32>,
    } else {
    }
    %c0 = arith.constant 0 : index
    %c0_1 = arith.constant 0 : index
    %3 = vector.load %arg2[%c0, %c0_1] : memref<128x128xf32, #tpu.memory_space<vmem>>, vector<128x128xf32>
    %4 = arith.truncf %3 : vector<128x128xf32> to vector<128x128xbf16>
    %c0_2 = arith.constant 0 : index
    %c0_3 = arith.constant 0 : index
    %5 = vector.load %arg3[%c0_2, %c0_3] : memref<128x512xbf16, #tpu.memory_space<vmem>>, vector<128x512xbf16>
    %cst = arith.constant dense<0.000000e+00> : vector<128x512xf32>
    %6 = tpu.matmul %4, %5, %cst {dimension_numbers = #tpu.dot_dimension_numbers<[1], [0], [0], [1], [0, 0, 1, 1], [], []>} : vector<128x128xbf16>, vector<128x512xbf16>, vector<128x512xf32> -> vector<128x512xf32>
    %c0_4 = arith.constant 0 : index
    %c0_5 = arith.constant 0 : index
    %7 = vector.load %arg4[%c0_4, %c0_5] : memref<1x512xf32, #tpu.memory_space<vmem>>, vector<1x512xf32>
    %8 = vector.broadcast %7 : vector<1x512xf32> to vector<128x512xf32>
    %9 = arith.addf %6, %8 : vector<128x512xf32>
    %cst_6 = arith.constant 5.000000e-01 : f32
    %10 = vector.broadcast %cst_6 : f32 to vector<128x512xf32>
    %11 = arith.mulf %10, %9 : vector<128x512xf32>
    %cst_7 = arith.constant 0.707106769 : f32
    %12 = vector.broadcast %cst_7 : f32 to vector<128x512xf32>
    %13 = arith.mulf %9, %12 : vector<128x512xf32>
    %14 = math.erf %13 : vector<128x512xf32>
    %cst_8 = arith.constant 1.000000e+00 : f32
    %15 = vector.broadcast %cst_8 : f32 to vector<128x512xf32>
    %16 = arith.addf %15, %14 : vector<128x512xf32>
    %17 = arith.mulf %11, %16 : vector<128x512xf32>
    %c0_9 = arith.constant 0 : index
    %c0_10 = arith.constant 0 : index
    %18 = vector.load %arg8[%c0_9, %c0_10] : memref<128x128xf32, #tpu.memory_space<vmem>>, vector<128x128xf32>
    %19 = arith.truncf %17 : vector<128x512xf32> to vector<128x512xbf16>
    %c0_11 = arith.constant 0 : index
    %c0_12 = arith.constant 0 : index
    %20 = vector.load %arg5[%c0_11, %c0_12] : memref<512x128xbf16, #tpu.memory_space<vmem>>, vector<512x128xbf16>
    %cst_13 = arith.constant dense<0.000000e+00> : vector<128x128xf32>
    %21 = tpu.matmul %19, %20, %cst_13 {dimension_numbers = #tpu.dot_dimension_numbers<[1], [0], [0], [1], [0, 0, 1, 1], [], []>} : vector<128x512xbf16>, vector<512x128xbf16>, vector<128x128xf32> -> vector<128x128xf32>
    %22 = arith.addf %18, %21 : vector<128x128xf32>
    %c0_14 = arith.constant 0 : index
    %c0_15 = arith.constant 0 : index
    %23 = vector.load %arg8[%c0_14, %c0_15] : memref<128x128xf32, #tpu.memory_space<vmem>>, vector<128x128xf32>
    tpu.vector_store %arg8[%c0_14, %c0_15], %22 {strides = array<i32>} : memref<128x128xf32, #tpu.memory_space<vmem>>, vector<128x128xf32>,
    %c0_i32_16 = arith.constant 0 : i32
    %24 = arith.cmpi eq, %arg1, %c0_i32_16 : i32
    %25 = arith.extui %24 : i1 to i32
    %c0_i32_17 = arith.constant 0 : i32
    %26 = arith.cmpi ne, %25, %c0_i32_17 : i32
    scf.if %26 {
      %c0_18 = arith.constant 0 : index
      %c0_19 = arith.constant 0 : index
      %27 = vector.load %arg8[%c0_18, %c0_19] : memref<128x128xf32, #tpu.memory_space<vmem>>, vector<128x128xf32>
      %c0_20 = arith.constant 0 : index
      %c0_21 = arith.constant 0 : index
      %28 = vector.load %arg6[%c0_20, %c0_21] : memref<1x128xf32, #tpu.memory_space<vmem>>, vector<1x128xf32>
      %29 = vector.broadcast %28 : vector<1x128xf32> to vector<128x128xf32>
      %30 = arith.addf %27, %29 : vector<128x128xf32>
      %c0_22 = arith.constant 0 : index
      %c0_23 = arith.constant 0 : index
      %31 = vector.load %arg7[%c0_22, %c0_23] : memref<128x128xf32, #tpu.memory_space<vmem>>, vector<128x128xf32>
      tpu.vector_store %arg7[%c0_22, %c0_23], %30 {strides = array<i32>} : memref<128x128xf32, #tpu.memory_space<vmem>>, vector<128x128xf32>,
    } else {
    }
    return
  }
  func.func @transform_0(%arg0: i32, %arg1: i32) -> (i32, i32) {
    %c0_i32 = arith.constant 0 : i32
    %c0_i32_0 = arith.constant 0 : i32
    return %arg0, %c0_i32 : i32, i32
  }
  func.func @transform_1(%arg0: i32, %arg1: i32) -> (i32, i32) {
    %c0_i32 = arith.constant 0 : i32
    %c0_i32_0 = arith.constant 0 : i32
    return %c0_i32, %arg1 : i32, i32
  }
  func.func @transform_2(%arg0: i32, %arg1: i32) -> (i32, i32) {
    %c0_i32 = arith.constant 0 : i32
    %c0_i32_0 = arith.constant 0 : i32
    return %c0_i32, %arg1 : i32, i32
  }
  func.func @transform_3(%arg0: i32, %arg1: i32) -> (i32, i32) {
    %c0_i32 = arith.constant 0 : i32
    %c0_i32_0 = arith.constant 0 : i32
    return %arg1, %c0_i32 : i32, i32
  }
  func.func @transform_4(%arg0: i32, %arg1: i32) -> (i32, i32) {
    %c0_i32 = arith.constant 0 : i32
    %c0_i32_0 = arith.constant 0 : i32
    %c0_i32_1 = arith.constant 0 : i32
    return %c0_i32, %c0_i32_0 : i32, i32
  }
  func.func @transform_5(%arg0: i32, %arg1: i32) -> (i32, i32) {
    %c0_i32 = arith.constant 0 : i32
    %c0_i32_0 = arith.constant 0 : i32
    return %arg0, %c0_i32 : i32, i32
  }
}

</mosaic_0001>

<bundles_post_ra>
// kernel: mlp_pallas.1
= control target key start
LH: loop header
LB: loop body
LE: loop exit
PB: predicated region body
PF: predicated region fallthrough
CT: control target
= control target key end

     0   :  { %s3559_s0 = inlined_call_operand.hbm [shape: f32[256,128], index: 0, kind: input, shape index: {}]   ;;  %s3560_s1 = inlined_call_operand.hbm [shape: bf16[128,512], index: 1, kind: input, shape index: {}]   ;;  %s3561_s2 = inlined_call_operand.hbm [shape: f32[1,512], index: 2, kind: input, shape index: {}]   ;;  %s3562_s3 = inlined_call_operand.hbm [shape: bf16[512,128], index: 3, kind: input, shape index: {}]   ;;  %s3563_s4 = inlined_call_operand.hbm [shape: f32[1,128], index: 4, kind: input, shape index: {}]   ;;  %s3564_s5 = inlined_call_operand.hbm [shape: f32[256,128], index: 5, kind: output, shape index: {}]  }
   0x1   :  { %3570 = sst [smem:[#allocation23_spill]] %s3560_s1 }
   0x2   :  { %10 = vsyncpa [#allocation4], 0 }
   0x3   :  { %12 = vsyncpa [#allocation4 + $0x1], 0 }
   0x4   :  { %13 = vsyncpa [#allocation7], 0 }
   0x5   :  { %14 = vsyncpa [#allocation10], 0 }
   0x6   :  { %15 = vsyncpa [#allocation5], 0 }
   0x7   :  { %17 = vsyncpa [#allocation5 + $0x1], 0  ;;  %s2687_s18 = smov 0   ;;  %s2689_s19 = smov 0  }
   0x8   :  { %s2691_s20 = smov 0   ;;  %s2693_s21 = smov 0  }
   0x9   :  { %s2695_s22 = smov 0   ;;  %s2697_s23 = smov 0  }
   0xa LB: > { %s1870_s24 = sadd.s32 4294967295, %s2640_s23   ;;  %s1871_s25 = sadd.s32 4294967294, %s2640_s23   ;;  %s2640_s23 = sphi %s2697_s23, %s23_s23   ;;  %s2636_s22 = sphi %s2695_s22, %s3603_s22   ;;  %s2632_s21 = sphi %s2693_s21, %s3602_s21   ;;  %s2628_s20 = sphi %s2691_s20, %s3601_s20   ;;  %s2624_s19 = sphi %s2689_s19, %s3600_s19   ;;  %s2620_s18 = sphi %s2687_s18, %s3599_s18  }
   0xb   : > { %p55_p0 = scmp.ne.s32.totalorder %s2624_s19, %s2620_s18  ;;  %p2721_p1 = scmp.eq.s32.totalorder %s1870_s24, 0 }
   0xc   : > { %p2725_p2 = scmp.eq.s32.totalorder %s1870_s24, 1  ;;  %p184_p3 = scmp.eq.s32.totalorder %s1871_s25, 1 }
   0xd   : > { %s3571_s26 = scalar_select %p2721_p1, 1, 0 }
   0xe   : > { %s3572_s27 = scalar_select %p2725_p2, 1, 0 }
   0xf   : > { %p2731_p4 = por %p2721_p1, %p55_p0  ;;  %p1872_p5 = scmp.ge.s32.totalorder %s2640_s23, 1 }
  0x10   : > { %p2736_p6 = por %p184_p3, %p55_p0  ;;  %p191_p7 = scmp.lt.s32.totalorder %s2640_s23, 3 }
  0x11   : > { %s3573_s28 = scalar_select %p2731_p4, 1, 0 }
  0x12   : > { %s3574_s29 = scalar_select %p2736_p6, 1, 0 }
  0x13   : > { %p2741_p8 = pnand %p1872_p5, %p191_p7  ;;  %s2642_s6 = smov [#allocation6]  }
  0x14   : > { %3575 = sst [smem:[#allocation17_spill]] %s3574_s29  ;;  %s206_s7 = sshll.u32 %s2642_s6, 4  ;;  %s2745_s7 = int_to_ptr.vmem [resolvable:$true] %s206_s7 }
  0x15   : > { %s3576_s30 = scalar_select %p2741_p8, 1, 0 }
  0x16   : > { %p2108_p9 = pneg %p2741_p8  ;;  %s2643_s9 = smov [#allocation9]  }
  0x17   : > { %s236_s10 = sshll.u32 %s2643_s9, 4  ;;  %s3578_s1 = sld [smem:[#allocation23_spill]]  ;;  %s2756_s10 = int_to_ptr.vmem [resolvable:$true] %s236_s10 }
  0x18   : > { %p2752_p11 = pnand %p2108_p9, %p2721_p1 }
  0x1a   : > { %p2766_p13 = pneg %p2752_p11 }
  0x1d   : > { %s2408_s13 = scalar_lea.hbm %s3578_s1, 4096 }
  0x1e   : > { %p2409_p12 = scmp.ne.s32.totalorder %s3578_s1, %s2408_s13  ;;  %p2415_p5 = scmp.lt.u32.totalorder %s2408_s13, %s3578_s1 }
  0x20   : > { %p2411_p0 = pnand %p2766_p13, %p2409_p12 }
  0x22   : > { %p2412_p3 = pneg %p2411_p0 }
  0x24   : > { %p2417_p7 = pnand %p2415_p5, %p2412_p3 }
  0x26   : > { %2420 = shalt.err (!%p2417_p7)
}
  0x27   : > { %s2421_s25 = scalar_lea.vmem %s2745_s7, 4096  ;;  %p2429_p1 = scmp.lt.s32.totalorder %s2745_s7, %s2745_s7 }
  0x28   : > { %p2422_p9 = scmp.ne.s32.totalorder %s2745_s7, %s2421_s25  ;;  %p2430_p4 = scmp.lt.s32.totalorder %s2421_s25, %s2421_s25 }
  0x2a   : > { %p2424_p10 = pnand %p2422_p9, %p2766_p13  ;;  %p2431_p12 = por %p2430_p4, %p2429_p1 }
  0x2c   : > { %p2425_p6 = pneg %p2424_p10 }
  0x2e   : > { %p2432_p0 = pnand %p2431_p12, %p2425_p6 }
  0x30   : > { %2435 = shalt.err (!%p2432_p0)
}
  0x31   : > { %s2644_s6 = smov 256   ;;  %s2645_s9 = smov 16  }
  0x32   : > { %2111 = dma.hbm_to_vmem [thread:$0]  (!%p2752_p11), %s3578_s1, 4096, %s2745_s7, [#allocation7], %s2644_s6, %s2644_s6, %s2645_s9  }
  0x33   : > { %s2436_s15 = scalar_lea.hbm %s3562_s3, 4096 }
  0x34   : > { %p2437_p1 = scmp.ne.s32.totalorder %s3562_s3, %s2436_s15  ;;  %p2443_p10 = scmp.lt.u32.totalorder %s2436_s15, %s3562_s3 }
  0x36   : > { %p2439_p4 = pnand %p2437_p1, %p2766_p13 }
  0x38   : > { %p2440_p6 = pneg %p2439_p4 }
  0x3a   : > { %p2445_p3 = pnand %p2443_p10, %p2440_p6 }
  0x3c   : > { %2448 = shalt.err (!%p2445_p3)
}
  0x3d   : > { %s2449_s7 = scalar_lea.vmem %s2756_s10, 4096  ;;  %p2457_p12 = scmp.lt.s32.totalorder %s2756_s10, %s2756_s10 }
  0x3e   : > { %p2450_p5 = scmp.ne.s32.totalorder %s2756_s10, %s2449_s7  ;;  %p2458_p0 = scmp.lt.s32.totalorder %s2449_s7, %s2449_s7 }
  0x40   : > { %p2452_p7 = pnand %p2450_p5, %p2766_p13  ;;  %p2459_p1 = por %p2458_p0, %p2457_p12 }
  0x42   : > { %p2453_p9 = pneg %p2452_p7 }
  0x44   : > { %p2460_p4 = pnand %p2459_p1, %p2453_p9 }
  0x46   : > { %2463 = shalt.err (!%p2460_p4)
}
  0x47   : > { %s2646_s6 = smov 64   ;;  %s2647_s29 = smov 4  }
  0x48   : > { %2117 = dma.hbm_to_vmem [thread:$0]  (!%p2752_p11), %s3562_s3, 4096, %s2756_s10, [#allocation10], %s2646_s6, %s2646_s6, %s2647_s29  }
  0x49   : > { %s2648_s12 = smov [#allocation8]   ;;  %s2649_s14 = smov [#allocation11]  }
  0x4a   : > { %s223_s13 = sshll.u32 %s2648_s12, 4  ;;  %s250_s15 = sshll.u32 %s2649_s14, 4  ;;  %s224_s13 = int_to_ptr.vmem [resolvable:$true] %s223_s13  ;;  %s2810_s15 = int_to_ptr.vmem [resolvable:$true] %s250_s15 }
  0x4b   : > { %s2464_s25 = scalar_lea.hbm %s3561_s2, 64 }
  0x4c   : > { %p2465_p6 = scmp.ne.s32.totalorder %s3561_s2, %s2464_s25  ;;  %p2471_p5 = scmp.lt.u32.totalorder %s2464_s25, %s3561_s2 }
  0x4e   : > { %p2467_p10 = pnand %p2465_p6, %p2766_p13 }
  0x50   : > { %p2468_p3 = pneg %p2467_p10 }
  0x52   : > { %p2473_p7 = pnand %p2471_p5, %p2468_p3 }
  0x54   : > { %2476 = shalt.err (!%p2473_p7)
}
  0x55   : > { %s2477_s6 = scalar_lea.vmem %s224_s13, 64  ;;  %p2485_p1 = scmp.lt.s32.totalorder %s224_s13, %s224_s13 }
  0x56   : > { %p2478_p9 = scmp.ne.s32.totalorder %s224_s13, %s2477_s6  ;;  %p2486_p4 = scmp.lt.s32.totalorder %s2477_s6, %s2477_s6 }
  0x58   : > { %p2480_p12 = pnand %p2478_p9, %p2766_p13  ;;  %p2487_p8 = por %p2486_p4, %p2485_p1 }
  0x5a   : > { %p2481_p0 = pneg %p2480_p12 }
  0x5c   : > { %p2488_p2 = pnand %p2487_p8, %p2481_p0 }
  0x5e   : > { %2491 = shalt.err (!%p2488_p2)
}
  0x5f   : > { %2114 = dma.hbm_to_vmem [thread:$0]  (!%p2752_p11), %s3561_s2, 64, %s224_s13, [#allocation7]  }
  0x60   : > { %s2492_s14 = scalar_lea.hbm %s3563_s4, 16 }
  0x61   : > { %p2493_p6 = scmp.ne.s32.totalorder %s3563_s4, %s2492_s14  ;;  %p2499_p2 = scmp.lt.u32.totalorder %s2492_s14, %s3563_s4 }
  0x63   : > { %p2495_p10 = pnand %p2493_p6, %p2766_p13 }
  0x65   : > { %p2496_p3 = pneg %p2495_p10 }
  0x67   : > { %p2501_p8 = pnand %p2499_p2, %p2496_p3 }
  0x69   : > { %2504 = shalt.err (!%p2501_p8)
}
  0x6a   : > { %s2505_s13 = scalar_lea.vmem %s2810_s15, 16  ;;  %s2512_s9 = scalar_lea.vmem %s2810_s15, 32 }
  0x6b   : > { %p2506_p5 = scmp.ne.s32.totalorder %s2810_s15, %s2505_s13  ;;  %p2513_p12 = scmp.lt.s32.totalorder %s2810_s15, %s2810_s15 }
  0x6c   : > { %p2514_p0 = scmp.lt.s32.totalorder %s2512_s9, %s2505_s13 }
  0x6d   : > { %p2508_p7 = pnand %p2506_p5, %p2766_p13 }
  0x6e   : > { %p2515_p1 = por %p2514_p0, %p2513_p12 }
  0x6f   : > { %p2509_p9 = pneg %p2508_p7 }
  0x71   : > { %p2516_p4 = pnand %p2515_p1, %p2509_p9 }
  0x73   : > { %2519 = shalt.err (!%p2516_p4)
}
  0x74   : > { %2120 = dma.hbm_to_vmem [thread:$0]  (!%p2752_p11), %s3563_s4, 16, %s2810_s15, [#allocation10]  }
  0x75   : > { %s35_s16 = sadd.s32 1, %s2636_s22  ;;  %s42_s1 = sadd.s32 1, %s2628_s20 }
  0x76   : > { %p37_p13 = scmp.ge.s32.totalorder %s35_s16, 2  ;;  %p49_p6 = scmp.ne.s32.totalorder %s2628_s20, %s2624_s19 }
  0x77   : > { %p50_p10 = scmp.eq.s32.totalorder %s2640_s23, 0  ;;  %p2133_p3 = scmp.lt.s32.totalorder %s2640_s23, 2 }
  0x78   : > { %s3605_s16 = smov (%p37_p13, %s35_s16), 0  ;;  %p3580_p8 = scmp.ne.s32.totalorder %s3572_s27, 0 }
  0x79   : > { %p51_p2 = por %p50_p10, %p49_p6  ;;  %s39_s29 = ssub.s32 %s2636_s22, %s3605_s16 }
  0x7a   : > { %p2864_p5 = por %p3580_p8, %p49_p6  ;;  %s261_s11 = sand.u32 1, %s2628_s20  }
  0x7b   : > { %p40_p7 = scmp.eq.s32.totalorder %s39_s29, 0  ;;  %s1878_s15 = sshll.u32 %s261_s11, 7 }
  0x7c   : > { %s1958_s12 = sshll.u32 %s2636_s22, 11  ;;  %s265_s27 = scalar_lea.vmem [#allocation3], %s1878_s15 }
  0x7d   : > { %s2873_s14 = scalar_select %p40_p7, %s2628_s20, %s42_s1  }
  0x7e   : > { %s2878_s25 = scalar_lea.hbm %s3559_s0, %s1958_s12  ;;  %s272_s7 = sshll.u32 %s265_s27, 4  ;;  %s2886_s7 = int_to_ptr.vmem [resolvable:$true] %s272_s7 }
  0x7f   : > { %p2882_p11 = pnand %p2133_p3, %p51_p2  ;;  %s2888_s9 = scalar_lea.sflag [#allocation4], %s261_s11 }
  0x80   : > { %s2520_s10 = scalar_lea.hbm %s2878_s25, 2048  ;;  %s2525_s29 = scalar_lea.hbm %s3559_s0, 4096 }
  0x81   : > { %p2521_p9 = scmp.ne.s32.totalorder %s2878_s25, %s2520_s10  ;;  %p2522_p12 = pneg %p2882_p11 }
  0x82   : > { %p2526_p4 = scmp.lt.u32.totalorder %s2878_s25, %s3559_s0  ;;  %p2527_p13 = scmp.lt.u32.totalorder %s2525_s29, %s2520_s10 }
  0x83   : > { %p2523_p0 = pnand %p2522_p12, %p2521_p9  ;;  %p2529_p10 = scmp.lt.u32.totalorder %s2520_s10, %s2878_s25 }
  0x84   : > { %p2528_p6 = por %p2527_p13, %p2526_p4 }
  0x85   : > { %p2524_p1 = pneg %p2523_p0 }
  0x86   : > { %p2530_p3 = por %p2529_p10, %p2528_p6 }
  0x88   : > { %p2531_p2 = pnand %p2530_p3, %p2524_p1 }
  0x8a   : > { %2534 = shalt.err (!%p2531_p2)
}
  0x8b   : > { %s2535_s11 = scalar_lea.vmem %s2886_s7, 2048  ;;  %s2650_s17 = smov [#allocation3]  }
  0x8c   : > { %p2536_p8 = scmp.ne.s32.totalorder %s2886_s7, %s2535_s11  ;;  %s2540_s24 = sshll.u32 %s2650_s17, 4  ;;  %s2541_s24 = int_to_ptr.vmem [resolvable:$false] %s2540_s24 }
  0x8d   : > { %s2542_s27 = scalar_lea.vmem %s2541_s24, 4096  ;;  %p2543_p0 = scmp.lt.s32.totalorder %s2886_s7, %s2541_s24 }
  0x8e   : > { %p2538_p7 = pnand %p2536_p8, %p2522_p12  ;;  %p2544_p4 = scmp.lt.s32.totalorder %s2542_s27, %s2535_s11 }
  0x90   : > { %p2539_p9 = pneg %p2538_p7  ;;  %p2545_p13 = por %p2544_p4, %p2543_p0 }
  0x92   : > { %p2546_p6 = pnand %p2545_p13, %p2539_p9 }
  0x94   : > { %2549 = shalt.err (!%p2546_p6)
}
  0x95   : > { %s2651_s10 = smov 128   ;;  %s2652_s6 = smov 8  }
  0x96   : > { %2124 = dma.hbm_to_vmem [thread:$0]  (!%p2882_p11), %s2878_s25, 2048, %s2886_s7, %s2888_s9, %s2651_s10, %s2651_s10, %s2652_s6  }
  0x97   : > { %p3583_p12 = scmp.ne.s32.totalorder %s3576_s30, 0 }
  0x99   : > { %284 = sbr.rel (%p3583_p12) target bundleno = 769 (0x301), region = 40 }
  0xa0   : > { %s2919_s1 = sand.u32 1, %s2624_s19   ;;  %p3584_p1 = scmp.ne.s32.totalorder %s3573_s28, 0 }
  0xa1   : > { %s1882_s29 = sshll.u32 %s2919_s1, 7  ;;  %s287_s15 = scalar_lea.sflag [#allocation4], %s2919_s1 }
  0xa2   : > { %s2925_s12 = scalar_lea.vmem [#allocation3], %s1882_s29 }
  0xa3   : > { %2603 = dma.done.wait (%p3584_p1), %s287_s15, 2048  }
  0xa4   : > { %2605 = vsyncadd (%p3584_p1), %s287_s15, 4294965248  ;;  %p3585_p11 = scmp.ne.s32.totalorder %s3571_s26, 0 }
  0xa6   : > { %2607 = dma.done.wait (%p3585_p11), [#allocation7], 4160  }
  0xa7   : > { %2609 = vsyncadd (%p3585_p11), [#allocation7], 4294963136 }
  0xa8   : > { %2611 = dma.done.wait (%p3585_p11), [#allocation10], 4112  }
  0xa9   : > { %2613 = vsyncadd (%p3585_p11), [#allocation10], 4294963184  ;;  %v2653_v0 = vmov 0   ;;  %v2200_v1 = vld [vmem:[#allocation6 + $0x4] ss:$16 sps:$4 sm:$0xff]   ;;  %v360_v34 = vld [vmem:[%s2925_s12 + $0x8] sm:$0xff] }
  0xaa   : > { %629 = vmatprep.mubr.bf16.mxu0 %v2653_v0  ;;  %742 = vmatprep.mubr.bf16.mxu1 %v2653_v0  ;;  %v2202_v2 = vld [vmem:[#allocation6 + $0xc] ss:$16 sps:$4 sm:$0xff]   ;;  %v2204_v3 = vld [vmem:[#allocation6] ss:$16 sps:$4 sm:$0xff]   ;;  %v2205_v4 = vld [vmem:[#allocation6 + $0x8] ss:$16 sps:$4 sm:$0xff]  }
  0xab   : > { %597 = vmatprep.subr.bf16.mxu0 %v2200_v1  ;;  %710 = vmatprep.subr.bf16.mxu1 %v2202_v2  ;;  %v2206_v5 = vld [vmem:[#allocation6 + $0x24] ss:$16 sps:$4 sm:$0xff]   ;;  %v2208_v6 = vld [vmem:[#allocation6 + $0x2c] ss:$16 sps:$4 sm:$0xff]   ;;  %v2210_v7 = vld [vmem:[#allocation6 + $0x20] ss:$16 sps:$4 sm:$0xff]  }
  0xac   : > { %598 = vmatpush1.bf16.msra.mxu0 %v2204_v3  ;;  %711 = vmatpush1.bf16.msra.mxu1 %v2205_v4  ;;  %v2211_v8 = vld [vmem:[#allocation6 + $0x28] ss:$16 sps:$4 sm:$0xff]   ;;  %v2212_v9 = vld [vmem:[#allocation6 + $0x44] ss:$16 sps:$4 sm:$0xff]   ;;  %v2214_v10 = vld [vmem:[#allocation6 + $0x4c] ss:$16 sps:$4 sm:$0xff]  }
  0xad   : > { %599 = vmatprep.subr.bf16.mxu0 %v2206_v5  ;;  %712 = vmatprep.subr.bf16.mxu1 %v2208_v6  ;;  %v2216_v11 = vld [vmem:[#allocation6 + $0x40] ss:$16 sps:$4 sm:$0xff]   ;;  %v2217_v12 = vld [vmem:[#allocation6 + $0x48] ss:$16 sps:$4 sm:$0xff]   ;;  %v2218_v13 = vld [vmem:[#allocation6 + $0x64] ss:$16 sps:$4 sm:$0xff]  }
  0xae   : > { %v2220_v14 = vld [vmem:[#allocation6 + $0x6c] ss:$16 sps:$4 sm:$0xff]   ;;  %v2222_v15 = vld [vmem:[#allocation6 + $0x60] ss:$16 sps:$4 sm:$0xff]   ;;  %v2223_v16 = vld [vmem:[#allocation6 + $0x68] ss:$16 sps:$4 sm:$0xff]  }
  0xaf   : > { %v2224_v17 = vld [vmem:[#allocation6 + $0x84] ss:$16 sps:$4 sm:$0xff]   ;;  %v2226_v18 = vld [vmem:[#allocation6 + $0x8c] ss:$16 sps:$4 sm:$0xff]   ;;  %v2228_v19 = vld [vmem:[#allocation6 + $0x80] ss:$16 sps:$4 sm:$0xff]  }
  0xb0   : > { %600 = vmatpush1.bf16.msra.mxu0 %v2210_v7  ;;  %713 = vmatpush1.bf16.msra.mxu1 %v2211_v8  ;;  %v2229_v20 = vld [vmem:[#allocation6 + $0x88] ss:$16 sps:$4 sm:$0xff]   ;;  %v2230_v21 = vld [vmem:[#allocation6 + $0xa4] ss:$16 sps:$4 sm:$0xff]   ;;  %v2232_v22 = vld [vmem:[#allocation6 + $0xac] ss:$16 sps:$4 sm:$0xff]  }
  0xb1   : > { %601 = vmatprep.subr.bf16.mxu0 %v2212_v9  ;;  %714 = vmatprep.subr.bf16.mxu1 %v2214_v10  ;;  %v2234_v23 = vld [vmem:[#allocation6 + $0xa0] ss:$16 sps:$4 sm:$0xff]   ;;  %v2235_v24 = vld [vmem:[#allocation6 + $0xa8] ss:$16 sps:$4 sm:$0xff]   ;;  %v2236_v25 = vld [vmem:[#allocation6 + $0xc4] ss:$16 sps:$4 sm:$0xff]  }
  0xb2   : > { %v2238_v26 = vld [vmem:[#allocation6 + $0xcc] ss:$16 sps:$4 sm:$0xff]   ;;  %v2240_v27 = vld [vmem:[#allocation6 + $0xc0] ss:$16 sps:$4 sm:$0xff]   ;;  %v2241_v28 = vld [vmem:[#allocation6 + $0xc8] ss:$16 sps:$4 sm:$0xff]  }
  0xb3   : > { %v2242_v29 = vld [vmem:[#allocation6 + $0xe4] ss:$16 sps:$4 sm:$0xff]   ;;  %v2244_v30 = vld [vmem:[#allocation6 + $0xec] ss:$16 sps:$4 sm:$0xff]   ;;  %v2246_v31 = vld [vmem:[#allocation6 + $0xe0] ss:$16 sps:$4 sm:$0xff]  }
  0xb4   : > { %602 = vmatpush1.bf16.msra.mxu0 %v2216_v11  ;;  %715 = vmatpush1.bf16.msra.mxu1 %v2217_v12  ;;  %v2247_v32 = vld [vmem:[#allocation6 + $0xe8] ss:$16 sps:$4 sm:$0xff]   ;;  %v359_v33 = vld [vmem:[%s2925_s12] sm:$0xff]  ;;  %v2252_v40 = vld [vmem:[#allocation9 + $0x48] sm:$0xff]   ;;  %s3470_s26 = scalar_lea.vmem [#allocation12], %s1882_s29  ;;  %s1959_s28 = sshll.u32 %s2632_s21, 11 }
  0xb5   : > { %603 = vmatprep.subr.bf16.mxu0 %v2218_v13  ;;  %716 = vmatprep.subr.bf16.mxu1 %v2220_v14  ;;  %v2248_v35 = vld [vmem:[#allocation9 + $0x40] sm:$0xff]   ;;  %v375_v37 = vpack.c.bf16 %v360_v34, %v359_v33  ;;  %v361_v41 = vld [vmem:[%s2925_s12 + $0x10] sm:$0xff]  ;;  %v362_v42 = vld [vmem:[%s2925_s12 + $0x18] sm:$0xff]  ;;  %s1745_s30 = sshll.u32 %s3470_s26, 4  ;;  %s3505_s13 = scalar_lea.hbm %s3564_s5, %s1959_s28  ;;  %s3507_s30 = int_to_ptr.vmem [resolvable:$true] %s1745_s30 }
  0xb6   : > { %v2249_v36 = vld [vmem:[#allocation9 + $0xc0] sm:$0xff]   ;;  %v2253_v43 = vld [vmem:[#allocation9 + $0xc8] sm:$0xff]   ;;  %v2256_v46 = vld [vmem:[#allocation9 + $0x50] sm:$0xff]   ;;  %v376_v48 = vpack.c.bf16 %v362_v42, %v361_v41  ;;  %s1732_s9 = scalar_lea.sflag [#allocation5], %s2919_s1  ;;  %s2550_s21 = scalar_lea.vmem %s3507_s30, 2048 }
  0xb7   : > { %v2250_v38 = vld [vmem:[#allocation9] sm:$0xff]   ;;  %v2254_v44 = vld [vmem:[#allocation9 + $0x8] sm:$0xff]   ;;  %v2257_v47 = vld [vmem:[#allocation9 + $0xd0] sm:$0xff]   ;;  %p2551_p10 = scmp.ne.s32.totalorder %s3507_s30, %s2550_s21  ;;  %s2654_s11 = smov [#allocation12]  }
  0xb8   : > { %604 = vmatpush1.bf16.msra.mxu0 %v2222_v15  ;;  %717 = vmatpush1.bf16.msra.mxu1 %v2223_v16  ;;  %v2251_v39 = vld [vmem:[#allocation9 + $0x80] sm:$0xff]   ;;  %v2255_v45 = vld [vmem:[#allocation9 + $0x88] sm:$0xff]   ;;  %v2258_v49 = vld [vmem:[#allocation9 + $0x10] sm:$0xff]   ;;  %s2554_s17 = sshll.u32 %s2654_s11, 4  ;;  %s2555_s17 = int_to_ptr.vmem [resolvable:$false] %s2554_s17 }
  0xb9   : > { %605 = vmatprep.subr.bf16.mxu0 %v2224_v17  ;;  %718 = vmatprep.subr.bf16.mxu1 %v2226_v18  ;;  %v2259_v50 = vld [vmem:[#allocation9 + $0x90] sm:$0xff]   ;;  %v2260_v51 = vld [vmem:[#allocation9 + $0x58] sm:$0xff]   ;;  %v364_v54 = vld [vmem:[%s2925_s12 + $0x28] sm:$0xff]  ;;  %p2552_p3 = pnand %p2551_p10, %p2864_p5  ;;  %s2556_s24 = scalar_lea.vmem %s2555_s17, 4096 }
  0xba   : > { %v363_v52 = vld [vmem:[%s2925_s12 + $0x20] sm:$0xff]  ;;  %v365_v62 = vld [vmem:[%s2925_s12 + $0x30] sm:$0xff]  ;;  %v366_v63 = vld [vmem:[%s2925_s12 + $0x38] sm:$0xff]  ;;  %p2557_p8 = scmp.lt.s32.totalorder %s3507_s30, %s2555_s17  ;;  %p2558_p7 = scmp.lt.s32.totalorder %s2556_s24, %s2550_s21 }
  0xbb   : > { %v2261_v53 = vld [vmem:[#allocation9 + $0xd8] sm:$0xff]   ;;  %v2264_v57 = vld [vmem:[#allocation9 + $0x60] sm:$0xff]   ;;  %v377_v59 = vpack.c.bf16 %v364_v54, %v363_v52  ;;  %v378_v1 = vpack.c.bf16 %v366_v63, %v365_v62  ;;  %v369_v5 = vld [vmem:[%s2925_s12 + $0x50] sm:$0xff]  ;;  %p2553_p2 = pneg %p2552_p3 }
  0xbc   : > { %606 = vmatpush1.bf16.msra.mxu0 %v2228_v19  ;;  %719 = vmatpush1.bf16.msra.mxu1 %v2229_v20  ;;  %v2262_v55 = vld [vmem:[#allocation9 + $0x18] sm:$0xff]   ;;  %v2265_v58 = vld [vmem:[#allocation9 + $0xe0] sm:$0xff]   ;;  %v373_v11 = vld [vmem:[%s2925_s12 + $0x70] sm:$0xff]  ;;  %p2559_p9 = por %p2558_p7, %p2557_p8 }
  0xbd   : > { %607 = vmatprep.subr.bf16.mxu0 %v2230_v21  ;;  %720 = vmatprep.subr.bf16.mxu1 %v2232_v22  ;;  %v2263_v56 = vld [vmem:[#allocation9 + $0x98] sm:$0xff]   ;;  %v2266_v60 = vld [vmem:[#allocation9 + $0x20] sm:$0xff]   ;;  %v2268_v14 = vld [vmem:[#allocation9 + $0x68] sm:$0xff]  }
  0xbe   : > { %v2267_v61 = vld [vmem:[#allocation9 + $0xa0] sm:$0xff]   ;;  %v370_v6 = vld [vmem:[%s2925_s12 + $0x58] sm:$0xff]  ;;  %v2269_v15 = vld [vmem:[#allocation9 + $0xe8] sm:$0xff]   ;;  %p2560_p0 = pnand %p2559_p9, %p2553_p2 }
  0xbf   : > { %v367_v2 = vld [vmem:[%s2925_s12 + $0x40] sm:$0xff]  ;;  %v368_v3 = vld [vmem:[%s2925_s12 + $0x48] sm:$0xff]  ;;  %v380_v7 = vpack.c.bf16 %v370_v6, %v369_v5  ;;  %v374_v12 = vld [vmem:[%s2925_s12 + $0x78] sm:$0xff] }
  0xc0   : > { %608 = vmatpush1.bf16.msra.mxu0 %v2234_v23  ;;  %721 = vmatpush1.bf16.msra.mxu1 %v2235_v24  ;;  %v379_v4 = vpack.c.bf16 %v368_v3, %v367_v2  ;;  %v371_v8 = vld [vmem:[%s2925_s12 + $0x60] sm:$0xff]  ;;  %v372_v9 = vld [vmem:[%s2925_s12 + $0x68] sm:$0xff]  ;;  %v382_v13 = vpack.c.bf16 %v374_v12, %v373_v11  ;;  %v2272_v18 = vld [vmem:[#allocation9 + $0x70] sm:$0xff]  }
  0xc1   : > { %609 = vmatprep.subr.bf16.mxu0 %v2236_v25  ;;  %722 = vmatprep.subr.bf16.mxu1 %v2238_v26  ;;  %v381_v10 = vpack.c.bf16 %v372_v9, %v371_v8  ;;  %v2270_v16 = vld [vmem:[#allocation9 + $0x28] sm:$0xff]   ;;  %v2273_v19 = vld [vmem:[#allocation9 + $0xf0] sm:$0xff]   ;;  %v2277_v22 = vld [vmem:[#allocation9 + $0xf8] sm:$0xff]   ;;  %v417_v25 = vlaneseq }
  0xc2   : > { %v2271_v17 = vld [vmem:[#allocation9 + $0xa8] sm:$0xff]   ;;  %v2274_v20 = vld [vmem:[#allocation9 + $0x30] sm:$0xff]   ;;  %v2278_v23 = vld [vmem:[#allocation9 + $0x38] sm:$0xff]  }
  0xc3   : > { %v2275_v21 = vld [vmem:[#allocation9 + $0xb0] sm:$0xff]   ;;  %v2279_v24 = vld [vmem:[#allocation9 + $0xb8] sm:$0xff]   ;;  %v418_v26 = vshrl.u32 %v417_v25, 7 }
  0xc4   : > { %610 = vmatpush1.bf16.msra.mxu0 %v2240_v27  ;;  %723 = vmatpush1.bf16.msra.mxu1 %v2241_v28 }
  0xc5   : > { %611 = vmatprep.subr.bf16.mxu0 %v2242_v29  ;;  %724 = vmatprep.subr.bf16.mxu1 %v2244_v30  ;;  %v419_v27 = vsub.s32 0, %v418_v26  ;;  %v427_v28 = vsub.s32 2, %v418_v26  ;;  %v415_v29 = vld [vmem:[#allocation8] sm:$0xf]  ;;  %v423_v30 = vsub.s32 1, %v418_v26 }
  0xc7   : > { %v2973_v33 = vrot.slane %v415_v29, %v427_v28  ;;  %v2975_v34 = vrot.slane %v415_v29, %v423_v30 }
  0xc8   : > { %612 = vmatpush1.bf16.msra.mxu0 %v2246_v31  ;;  %725 = vmatpush1.bf16.msra.mxu1 %v2247_v32  ;;  %v431_v31 = vsub.s32 3, %v418_v26  ;;  %v2971_v32 = vrot.slane %v415_v29, %v419_v27 }
  0xc9   : > { %1960 = vmatprep.subr.bf16.mxu0 %v2248_v35  ;;  %2024 = vmatprep.subr.bf16.mxu1 %v2249_v36 }
  0xca   : > { %v2977_v35 = vrot.slane %v415_v29, %v431_v31 }
  0xcb   : > { %630 = vmatmul.mubr.bf16.vlgmr.msra.gmra.mrb[0].mxu0 %v375_v37  ;;  %743 = vmatmul.mubr.bf16.vlgmr.msra.gmra.mrb[0].mxu1 %v375_v37 }
  0xcc   : > { %639 = vmatprep.mubr.bf16.mxu0 %v2653_v0  ;;  %752 = vmatprep.mubr.bf16.mxu1 %v2653_v0 }
  0xcd   : > { %1961 = vmatpush3.bf16.msra.mxu0 %v2250_v38  ;;  %2025 = vmatpush3.bf16.msra.mxu1 %v2251_v39 }
  0xce   : > { %1962 = vmatprep.subr.bf16.mxu0 %v2252_v40  ;;  %2026 = vmatprep.subr.bf16.mxu1 %v2253_v43 }
  0xd1   : > { %1963 = vmatpush3.bf16.msra.mxu0 %v2254_v44  ;;  %2027 = vmatpush3.bf16.msra.mxu1 %v2255_v45 }
  0xd2   : > { %1964 = vmatprep.subr.bf16.mxu0 %v2256_v46  ;;  %2028 = vmatprep.subr.bf16.mxu1 %v2257_v47 }
  0xd3   : > { %640 = vmatmul.mubr.bf16.gmra.mrb[4].mxu0 %v376_v48  ;;  %753 = vmatmul.mubr.bf16.gmra.mrb[4].mxu1 %v376_v48 }
  0xd4   : > { %649 = vmatprep.mubr.bf16.mxu0 %v2653_v0  ;;  %762 = vmatprep.mubr.bf16.mxu1 %v2653_v0 }
  0xd5   : > { %1965 = vmatpush3.bf16.msra.mxu0 %v2258_v49  ;;  %2029 = vmatpush3.bf16.msra.mxu1 %v2259_v50 }
  0xd6   : > { %1966 = vmatprep.subr.bf16.mxu0 %v2260_v51  ;;  %2030 = vmatprep.subr.bf16.mxu1 %v2261_v53 }
  0xd9   : > { %1967 = vmatpush3.bf16.msra.mxu0 %v2262_v55  ;;  %2031 = vmatpush3.bf16.msra.mxu1 %v2263_v56 }
  0xda   : > { %1968 = vmatprep.subr.bf16.mxu0 %v2264_v57  ;;  %2032 = vmatprep.subr.bf16.mxu1 %v2265_v58 }
  0xdb   : > { %650 = vmatmul.mubr.bf16.gmra.mrb[8].mxu0 %v377_v59  ;;  %763 = vmatmul.mubr.bf16.gmra.mrb[8].mxu1 %v377_v59 }
  0xdc   : > { %659 = vmatprep.mubr.bf16.mxu0 %v2653_v0  ;;  %772 = vmatprep.mubr.bf16.mxu1 %v2653_v0 }
  0xdd   : > { %1969 = vmatpush3.bf16.msra.mxu0 %v2266_v60  ;;  %2033 = vmatpush3.bf16.msra.mxu1 %v2267_v61 }
  0xde   : > { %1970 = vmatprep.subr.bf16.mxu0 %v2268_v14  ;;  %2034 = vmatprep.subr.bf16.mxu1 %v2269_v15 }
  0xe1   : > { %1971 = vmatpush3.bf16.msra.mxu0 %v2270_v16  ;;  %2035 = vmatpush3.bf16.msra.mxu1 %v2271_v17 }
  0xe2   : > { %1972 = vmatprep.subr.bf16.mxu0 %v2272_v18  ;;  %2036 = vmatprep.subr.bf16.mxu1 %v2273_v19 }
  0xe3   : > { %660 = vmatmul.mubr.bf16.gmra.mrb[12].mxu0 %v378_v1  ;;  %773 = vmatmul.mubr.bf16.gmra.mrb[12].mxu1 %v378_v1 }
  0xe4   : > { %669 = vmatprep.mubr.bf16.mxu0 %v2653_v0  ;;  %782 = vmatprep.mubr.bf16.mxu1 %v2653_v0 }
  0xe5   : > { %1973 = vmatpush3.bf16.msra.mxu0 %v2274_v20  ;;  %2037 = vmatpush3.bf16.msra.mxu1 %v2275_v21 }
  0xe6   : > { %2038 = vmatprep.subr.bf16.mxu1 %v2277_v22 }
  0xe9   : > { %2039 = vmatpush3.bf16.msra.mxu1 %v2279_v24 }
  0xeb   : > { %670 = vmatmul.mubr.bf16.gmra.mrb[16].mxu0 %v379_v4  ;;  %783 = vmatmul.mubr.bf16.gmra.mrb[16].mxu1 %v379_v4 }
  0xec   : > { %679 = vmatprep.mubr.bf16.mxu0 %v2653_v0  ;;  %792 = vmatprep.mubr.bf16.mxu1 %v2653_v0 }
  0xf3   : > { %680 = vmatmul.mubr.bf16.gmra.mrb[20].mxu0 %v380_v7  ;;  %793 = vmatmul.mubr.bf16.gmra.mrb[20].mxu1 %v380_v7 }
  0xf4   : > { %689 = vmatprep.mubr.bf16.mxu0 %v2653_v0  ;;  %802 = vmatprep.mubr.bf16.mxu1 %v2653_v0 }
  0xfb   : > { %690 = vmatmul.mubr.bf16.gmra.mrb[24].mxu0 %v381_v10  ;;  %803 = vmatmul.mubr.bf16.gmra.mrb[24].mxu1 %v381_v10 }
  0xfc   : > { %699 = vmatprep.mubr.bf16.mxu0 %v2653_v0  ;;  %812 = vmatprep.mubr.bf16.mxu1 %v2653_v0  ;;  %v2276_v0 = vld [vmem:[#allocation9 + $0x78] sm:$0xff]  }
  0xfd   : > { %1974 = vmatprep.subr.bf16.mxu0 %v2276_v0 }
  0xfe   : > { %1975 = vmatpush3.bf16.msra.mxu0 %v2278_v23 }
 0x103   : > { %700 = vmatmul.mubr.bf16.gmra.mrb[28].mxu0 %v382_v13  ;;  %813 = vmatmul.mubr.bf16.gmra.mrb[28].mxu1 %v382_v13 }
 0x19e   : > { %v631_v36 = vpop.f32.mrb[0].mxu0  ;;  %v744_v37 = vpop.f32.mrb[0].mxu1 }
 0x19f   : > { %v632_v38 = vadd.f32 %v631_v36, %v2971_v32  ;;  %v745_v39 = vadd.f32 %v744_v37, %v2973_v33  ;;  %v633_v40 = vpop.f32.mrb[1].mxu0  ;;  %v746_v41 = vpop.f32.mrb[1].mxu1 }
 0x1a0   : > { %v634_v42 = vadd.f32 %v633_v40, %v2975_v34  ;;  %v747_v43 = vadd.f32 %v746_v41, %v2977_v35  ;;  %v635_v44 = vpop.f32.mrb[2].mxu0  ;;  %v748_v45 = vpop.f32.mrb[2].mxu1 }
 0x1a1   : > { %v887_v46 = vmul.f32 0.70710677, %v632_v38  ;;  %v889_v47 = vmul.f32 0.70710677, %v745_v39  ;;  %v636_v50 = vadd.f32 %v635_v44, %v2971_v32  ;;  %v749_v51 = vadd.f32 %v748_v45, %v2973_v33  ;;  %v637_v52 = vpop.f32.mrb[3].mxu0  ;;  %v750_v53 = vpop.f32.mrb[3].mxu1 }
 0x1a2   : > { %v888_v48 = vmul.f32 0.70710677, %v634_v42  ;;  %v890_v49 = vmul.f32 0.70710677, %v747_v43  ;;  %v638_v54 = vadd.f32 %v637_v52, %v2975_v34  ;;  %v751_v55 = vadd.f32 %v750_v53, %v2977_v35 }
 0x1a3   : > { %2280 = verf.f32 %v887_v46  ;;  %v891_v56 = vmul.f32 0.70710677, %v636_v50  ;;  %v893_v57 = vmul.f32 0.70710677, %v749_v51  ;;  %v823_v11 = vmul.f32 0.5, %v632_v38 }
 0x1a4   : > { %2282 = verf.f32 %v889_v47  ;;  %v892_v58 = vmul.f32 0.70710677, %v638_v54  ;;  %v894_v60 = vmul.f32 0.70710677, %v751_v55  ;;  %v825_v18 = vmul.f32 0.5, %v745_v39 }
 0x1a5   : > { %2284 = verf.f32 %v888_v48  ;;  %v824_v19 = vmul.f32 0.5, %v634_v42  ;;  %v2994_v20 = vmul.f32 0.5, %v747_v43  ;;  %v827_v21 = vmul.f32 0.5, %v636_v50 }
 0x1a6   : > { %2286 = verf.f32 %v890_v49  ;;  %v641_v59 = vpop.f32.mrb[4].mxu0  ;;  %v754_v62 = vpop.f32.mrb[4].mxu1  ;;  %v829_v23 = vmul.f32 0.5, %v749_v51  ;;  %v2996_v28 = vmul.f32 0.5, %v638_v54  ;;  %v2998_v29 = vmul.f32 0.5, %v751_v55 }
 0x1a7   : > { %2288 = verf.f32 %v891_v56  ;;  %v642_v61 = vadd.f32 %v641_v59, %v2971_v32  ;;  %v643_v63 = vpop.f32.mrb[5].mxu0  ;;  %v755_v1 = vadd.f32 %v754_v62, %v2973_v33  ;;  %v756_v3 = vpop.f32.mrb[5].mxu1 }
 0x1a8   : > { %2290 = verf.f32 %v893_v57  ;;  %v644_v2 = vadd.f32 %v643_v63, %v2975_v34  ;;  %v645_v4 = vpop.f32.mrb[6].mxu0  ;;  %v757_v6 = vadd.f32 %v756_v3, %v2977_v35  ;;  %v758_v7 = vpop.f32.mrb[6].mxu1 }
 0x1a9   : > { %2292 = verf.f32 %v892_v58  ;;  %v895_v5 = vmul.f32 0.70710677, %v642_v61  ;;  %v647_v8 = vpop.f32.mrb[7].mxu0  ;;  %v897_v9 = vmul.f32 0.70710677, %v755_v1  ;;  %v760_v10 = vpop.f32.mrb[7].mxu1  ;;  %v646_v14 = vadd.f32 %v645_v4, %v2971_v32 }
 0x1aa   : > { %2294 = verf.f32 %v894_v60  ;;  %v896_v12 = vmul.f32 0.70710677, %v644_v2  ;;  %v898_v13 = vmul.f32 0.70710677, %v757_v6  ;;  %v759_v15 = vadd.f32 %v758_v7, %v2973_v33 }
 0x1ab   : > { %2296 = verf.f32 %v895_v5  ;;  %v648_v16 = vadd.f32 %v647_v8, %v2975_v34  ;;  %v899_v24 = vmul.f32 0.70710677, %v646_v14  ;;  %v761_v31 = vadd.f32 %v760_v10, %v2977_v35 }
 0x1ac   : > { %2298 = verf.f32 %v897_v9  ;;  %v901_v30 = vmul.f32 0.70710677, %v759_v15  ;;  %v3001_v39 = vmul.f32 0.5, %v642_v61  ;;  %v3003_v44 = vmul.f32 0.5, %v755_v1 }
 0x1ad   : > { %v2281_v17 = vpop.eup %2280  ;;  %2300 = verf.f32 %v896_v12  ;;  %v900_v40 = vmul.f32 0.70710677, %v648_v16  ;;  %v3005_v45 = vmul.f32 0.5, %v644_v2  ;;  %v3007_v46 = vmul.f32 0.5, %v757_v6 }
 0x1ae   : > { %v2283_v0 = vpop.eup %2282  ;;  %v1015_v22 = vadd.f32 1.0, %v2281_v17  ;;  %v651_v25 = vpop.f32.mrb[8].mxu0  ;;  %2302 = verf.f32 %v898_v13  ;;  %v3013_v53 = vmul.f32 0.5, %v646_v14  ;;  %v902_v57 = vmul.f32 0.70710677, %v761_v31 }
 0x1af   : > { %v764_v26 = vpop.f32.mrb[8].mxu1  ;;  %v2285_v27 = vpop.eup %2284  ;;  %v1017_v38 = vadd.f32 1.0, %v2283_v0  ;;  %2304 = verf.f32 %v899_v24  ;;  %v652_v58 = vadd.f32 %v651_v25, %v2971_v32  ;;  %v3028_v7 = vmul.f32 0.5, %v759_v15 }
 0x1b0   : > { %v653_v36 = vpop.f32.mrb[9].mxu0  ;;  %v2287_v37 = vpop.eup %2286  ;;  %v3011_v50 = vmul.f32 %v1015_v22, %v823_v11  ;;  %v1016_v51 = vadd.f32 1.0, %v2285_v27  ;;  %2306 = verf.f32 %v901_v30  ;;  %v765_v62 = vadd.f32 %v764_v26, %v2973_v33 }
 0x1b1   : > { %v766_v41 = vpop.f32.mrb[9].mxu1  ;;  %v655_v42 = vpop.f32.mrb[10].mxu0  ;;  %v3018_v60 = vmul.f32 %v1017_v38, %v825_v18  ;;  %2308 = verf.f32 %v900_v40  ;;  %v1018_v1 = vadd.f32 1.0, %v2287_v37  ;;  %v903_v3 = vmul.f32 0.70710677, %v652_v58 }
 0x1b2   : > { %v2289_v43 = vpop.eup %2288  ;;  %v768_v47 = vpop.f32.mrb[10].mxu1  ;;  %v654_v4 = vadd.f32 %v653_v36, %v2975_v34  ;;  %v3030_v8 = vmul.f32 0.5, %v648_v16  ;;  %v3032_v9 = vmul.f32 0.5, %v761_v31  ;;  %v3036_v12 = vmul.f32 %v1016_v51, %v824_v19 }
 0x1b3   : > { %v3009_v48 = vpop.f32.mrb[11].mxu0  ;;  %v2291_v49 = vpop.eup %2290  ;;  %v1019_v52 = vadd.f32 1.0, %v2289_v43  ;;  %2310 = verf.f32 %v902_v57  ;;  %v905_v0 = vmul.f32 0.70710677, %v765_v62  ;;  %v3049_v19 = vmul.f32 %v1018_v1, %v2994_v20 }
 0x1b4   : > { %v3015_v54 = vpop.f32.mrb[11].mxu1  ;;  %v2293_v55 = vpop.eup %2292  ;;  %v1021_v56 = vadd.f32 1.0, %v2291_v49  ;;  %2312 = verf.f32 %v903_v3  ;;  %v904_v25 = vmul.f32 0.70710677, %v654_v4  ;;  %v767_v26 = vadd.f32 %v766_v41, %v2977_v35 }
 0x1b5   : > { %v2295_v59 = vpop.eup %2294  ;;  %v3020_v61 = vmul.f32 %v1019_v52, %v827_v21  ;;  %v1020_v14 = vadd.f32 1.0, %v2293_v55  ;;  %v3056_v36 = vmul.f32 0.5, %v652_v58  ;;  %2314 = verf.f32 %v905_v0 }
 0x1b6   : > { %v2297_v63 = vpop.eup %2296  ;;  %v3023_v2 = vmul.f32 %v1021_v56, %v829_v23  ;;  %v661_v10 = vpop.f32.mrb[12].mxu0  ;;  %v1022_v21 = vadd.f32 1.0, %v2295_v59  ;;  %v656_v37 = vadd.f32 %v655_v42, %v2971_v32  ;;  %v769_v38 = vadd.f32 %v768_v47, %v2973_v33 }
 0x1b7   : > { %v2299_v5 = vpop.eup %2298  ;;  %v1159_v6 = vpack.c.bf16 %v3020_v61, %v3011_v50  ;;  %v3034_v11 = vpop.f32.mrb[12].mxu1  ;;  %v1023_v16 = vadd.f32 1.0, %v2297_v63  ;;  %v1084_v20 = vmul.f32 %v1020_v14, %v2996_v28  ;;  %v3061_v49 = vmul.f32 0.5, %v765_v62 }
 0x1b8   : > { %v1161_v13 = vpack.c.bf16 %v3023_v2, %v3018_v60  ;;  %v3040_v17 = vpop.f32.mrb[13].mxu0  ;;  %v3042_v18 = vpop.f32.mrb[13].mxu1  ;;  %v1025_v24 = vadd.f32 1.0, %v2299_v5  ;;  %2316 = verf.f32 %v904_v25  ;;  %v1086_v41 = vmul.f32 %v1022_v21, %v2998_v29 }
 0x1b9   : > { %v2301_v15 = vpop.eup %2300  ;;  %v3044_v22 = vpop.f32.mrb[14].mxu0  ;;  %v3065_v51 = vmul.f32 %v1023_v16, %v3001_v39  ;;  %v906_v52 = vmul.f32 0.70710677, %v767_v26  ;;  %v907_v55 = vmul.f32 0.70710677, %v656_v37  ;;  %v3070_v47 = vmul.f32 0.5, %v654_v4 }
 0x1ba   : > { %v3046_v23 = vpop.f32.mrb[14].mxu1  ;;  %v3052_v27 = vpop.f32.mrb[15].mxu0  ;;  %v1024_v43 = vadd.f32 1.0, %v2301_v15  ;;  %v3068_v57 = vmul.f32 %v1025_v24, %v3003_v44  ;;  %v909_v58 = vmul.f32 0.70710677, %v769_v38  ;;  %v658_v62 = vadd.f32 %v3009_v48, %v2975_v34 }
 0x1bb   : > { %v3054_v30 = vpop.f32.mrb[15].mxu1  ;;  %v2303_v31 = vpop.eup %2302  ;;  %2318 = verf.f32 %v906_v52  ;;  %v771_v29 = vadd.f32 %v3015_v54, %v2977_v35  ;;  %v3083_v1 = vmul.f32 0.5, %v767_v26  ;;  %v662_v3 = vadd.f32 %v661_v10, %v2971_v32 }
 0x1bc   : > { %v2305_v40 = vpop.eup %2304  ;;  %v1026_v42 = vadd.f32 1.0, %v2303_v31  ;;  %v3081_v44 = vmul.f32 %v1024_v43, %v3005_v45  ;;  %2320 = verf.f32 %v907_v55  ;;  %v3090_v14 = vmul.f32 0.5, %v656_v37 }
 0x1bd   : > { %v2307_v56 = vpop.eup %2306  ;;  %v1027_v59 = vadd.f32 1.0, %v2305_v40  ;;  %2322 = verf.f32 %v909_v58  ;;  %v908_v54 = vmul.f32 0.70710677, %v658_v62  ;;  %v910_v24 = vmul.f32 0.70710677, %v771_v29 }
 0x1be   : > { %v2309_v28 = vpop.eup %2308  ;;  %v3076_v39 = vpop.f32.mrb[16].mxu0  ;;  %v1029_v48 = vadd.f32 1.0, %v2307_v56  ;;  %v3097_v16 = vmul.f32 %v1026_v42, %v3007_v46  ;;  %v911_v10 = vmul.f32 0.70710677, %v662_v3  ;;  %v775_v37 = vadd.f32 %v3034_v11, %v2973_v33 }
 0x1bf   : > { %v3078_v63 = vpop.f32.mrb[16].mxu1  ;;  %v3086_v4 = vpop.f32.mrb[17].mxu0  ;;  %v1028_v0 = vadd.f32 1.0, %v2309_v28  ;;  %v3102_v31 = vmul.f32 %v1027_v59, %v3013_v53  ;;  %2324 = verf.f32 %v908_v54  ;;  %v664_v40 = vadd.f32 %v3040_v17, %v2975_v34 }
 0x1c0   : > { %v3088_v5 = vpop.f32.mrb[17].mxu1  ;;  %v3092_v15 = vpop.f32.mrb[18].mxu0  ;;  %2326 = verf.f32 %v910_v24  ;;  %v777_v46 = vadd.f32 %v3042_v18, %v2977_v35  ;;  %v1160_v52 = vpack.c.bf16 %v1084_v20, %v3036_v12  ;;  %v1162_v55 = vpack.c.bf16 %v1086_v41, %v3049_v19 }
 0x1c1   : > { %v3094_v21 = vpop.f32.mrb[18].mxu1  ;;  %v2311_v45 = vpop.eup %2310  ;;  %v3115_v53 = vmul.f32 %v1029_v48, %v3028_v7  ;;  %v3117_v58 = vmul.f32 0.5, %v769_v38  ;;  %v913_v11 = vmul.f32 0.70710677, %v775_v37  ;;  %v3120_v17 = vmul.f32 %v1028_v0, %v3030_v8 }
 0x1c2   : > { %v3099_v25 = vpop.f32.mrb[19].mxu0  ;;  %v2313_v26 = vpop.eup %2312  ;;  %v1030_v42 = vadd.f32 1.0, %v2311_v45  ;;  %2328 = verf.f32 %v911_v10  ;;  %v912_v54 = vmul.f32 0.70710677, %v664_v40  ;;  %1479 = vmatprep.mubr.bf16.mxu0 %v1160_v52  ;;  %1576 = vmatprep.mubr.bf16.mxu1 %v1162_v55  ;;  %v3122_v12 = vmul.f32 0.5, %v658_v62 }
 0x1c3   : > { %v3108_v43 = vpop.f32.mrb[19].mxu1  ;;  %v2315_v56 = vpop.eup %2314  ;;  %v1031_v59 = vadd.f32 1.0, %v2313_v26  ;;  %v3124_v18 = vmul.f32 0.5, %v771_v29  ;;  %v914_v19 = vmul.f32 0.70710677, %v777_v46  ;;  %v666_v7 = vadd.f32 %v3044_v22, %v2971_v32  ;;  %1480 = vmatmul.mubr.bf16.vlgmr.msra.gmra.mrb[32].mxu0 %v1159_v6  ;;  %1577 = vmatmul.mubr.bf16.vlgmr.msra.gmra.mrb[32].mxu1 %v1161_v13 }
 0x1c4   : > { %v2317_v28 = vpop.eup %2316  ;;  %v1033_v20 = vadd.f32 1.0, %v2315_v56  ;;  %2330 = verf.f32 %v913_v11  ;;  %v779_v41 = vadd.f32 %v3046_v23, %v2973_v33  ;;  %v668_v22 = vadd.f32 %v3052_v27, %v2975_v34 }
 0x1c5   : > { %v2319_v61 = vpop.eup %2318  ;;  %v3147_v60 = vmul.f32 %v1030_v42, %v3032_v9  ;;  %v1032_v2 = vadd.f32 1.0, %v2317_v28  ;;  %2332 = verf.f32 %v912_v54  ;;  %v915_v6 = vmul.f32 0.70710677, %v666_v7 }
 0x1c6   : > { %v3134_v8 = vpop.f32.mrb[20].mxu0  ;;  %v3136_v38 = vpop.f32.mrb[20].mxu1  ;;  %v3154_v23 = vmul.f32 %v1031_v59, %v3056_v36  ;;  %v3156_v27 = vmul.f32 0.5, %v662_v3  ;;  %2334 = verf.f32 %v914_v19  ;;  %v917_v45 = vmul.f32 0.70710677, %v779_v41 }
 0x1c7   : > { %v3142_v62 = vpop.f32.mrb[21].mxu0  ;;  %v3144_v50 = vpop.f32.mrb[21].mxu1  ;;  %v3160_v9 = vmul.f32 0.5, %v775_v37  ;;  %v3162_v10 = vmul.f32 0.5, %v664_v40  ;;  %v916_v26 = vmul.f32 0.70710677, %v668_v22  ;;  %v781_v52 = vadd.f32 %v3054_v30, %v2977_v35 }
 0x1c8   : > { %v3149_v13 = vpop.f32.mrb[22].mxu0  ;;  %v3151_v29 = vpop.f32.mrb[22].mxu1  ;;  %v3169_v36 = vmul.f32 %v1033_v20, %v3061_v49  ;;  %v3171_v3 = vmul.f32 0.5, %v777_v46  ;;  %2336 = verf.f32 %v915_v6  ;;  %v672_v56 = vadd.f32 %v3076_v39, %v2971_v32 }
 0x1c9   : > { %v2321_v48 = vpop.eup %2320  ;;  %v3158_v0 = vpop.f32.mrb[23].mxu0  ;;  %v3176_v37 = vmul.f32 %v1032_v2, %v3070_v47  ;;  %v1034_v40 = vadd.f32 1.0, %v2319_v61  ;;  %2338 = verf.f32 %v917_v45  ;;  %v918_v11 = vmul.f32 0.70710677, %v781_v52 }
 0x1ca   : > { %v2323_v24 = vpop.eup %2322  ;;  %v3166_v55 = vpop.f32.mrb[23].mxu1  ;;  %v1035_v30 = vadd.f32 1.0, %v2321_v48  ;;  %2340 = verf.f32 %v916_v26  ;;  %v919_v54 = vmul.f32 0.70710677, %v672_v56  ;;  %v785_v46 = vadd.f32 %v3078_v63, %v2973_v33 }
 0x1cb   : > { %v2325_v42 = vpop.eup %2324  ;;  %v1037_v59 = vadd.f32 1.0, %v2323_v24  ;;  %2342 = verf.f32 %v918_v11  ;;  %v674_v39 = vadd.f32 %v3086_v4, %v2975_v34  ;;  %v3186_v2 = vmul.f32 0.5, %v666_v7 }
 0x1cc   : > { %v2327_v28 = vpop.eup %2326  ;;  %v1036_v49 = vadd.f32 1.0, %v2325_v42  ;;  %2344 = verf.f32 %v919_v54  ;;  %v787_v6 = vadd.f32 %v3088_v5, %v2977_v35  ;;  %v3195_v63 = vmul.f32 %v1034_v40, %v3083_v1 }
 0x1cd   : > { %v2329_v20 = vpop.eup %2328  ;;  %v1038_v61 = vadd.f32 1.0, %v2327_v28  ;;  %v3197_v4 = vmul.f32 0.5, %v779_v41  ;;  %v3199_v24 = vmul.f32 0.5, %v668_v22  ;;  %v921_v26 = vmul.f32 0.70710677, %v785_v46 }
 0x1ce   : > { %v3182_v19 = vpop.f32.mrb[24].mxu0  ;;  %v3184_v47 = vpop.f32.mrb[24].mxu1  ;;  %v3206_v28 = vmul.f32 %v1035_v30, %v3090_v14  ;;  %v3209_v5 = vmul.f32 %v1037_v59, %v3117_v58  ;;  %v3211_v54 = vmul.f32 0.5, %v781_v52  ;;  %v3213_v1 = vmul.f32 0.5, %v672_v56 }
 0x1cf   : > { %v3190_v48 = vpop.f32.mrb[25].mxu0  ;;  %v3192_v45 = vpop.f32.mrb[25].mxu1  ;;  %v1164_v14 = vpack.c.bf16 %v3120_v17, %v3081_v44  ;;  %v3225_v58 = vmul.f32 %v1038_v61, %v3124_v18  ;;  %2346 = verf.f32 %v921_v26  ;;  %v922_v52 = vmul.f32 0.70710677, %v787_v6 }
 0x1d0   : > { %3586 = vst [vmem:[#allocation18_spill] sm:$0xff] %v3192_v45  ;;  %v3201_v42 = vpop.f32.mrb[26].mxu0  ;;  %v3203_v7 = vpop.f32.mrb[26].mxu1  ;;  %v920_v45 = vmul.f32 0.70710677, %v674_v39  ;;  %v1166_v56 = vpack.c.bf16 %v3147_v60, %v3097_v16  ;;  %v1163_v18 = vpack.c.bf16 %v3102_v31, %v3065_v51  ;;  %v1165_v16 = vpack.c.bf16 %v3115_v53, %v3068_v57 }
 0x1d1   : > { %3587 = vst [vmem:[#allocation19_spill] sm:$0xff] %v3201_v42  ;;  %3588 = vst [vmem:[#allocation20_spill] sm:$0xff] %v3203_v7  ;;  %v2331_v11 = vpop.eup %2330  ;;  %v3215_v41 = vpop.f32.mrb[27].mxu0  ;;  %v3220_v42 = vmul.f32 %v1036_v49, %v3122_v12  ;;  %v1039_v7 = vadd.f32 1.0, %v2329_v20  ;;  %1487 = vmatprep.mubr.bf16.mxu0 %v1164_v14  ;;  %v676_v12 = vadd.f32 %v3092_v15, %v2971_v32  ;;  %v3235_v20 = vmul.f32 0.5, %v674_v39 }
 0x1d2   : > { %v3217_v22 = vpop.f32.mrb[27].mxu1  ;;  %v2333_v40 = vpop.eup %2332  ;;  %v1041_v59 = vadd.f32 1.0, %v2331_v11  ;;  %v789_v49 = vadd.f32 %v3094_v21, %v2973_v33  ;;  %1584 = vmatprep.mubr.bf16.mxu1 %v1166_v56  ;;  %2348 = verf.f32 %v920_v45  ;;  %v3246_v11 = vmul.f32 0.5, %v787_v6  ;;  %1488 = vmatmul.mubr.bf16.gmra.mrb[36].mxu0 %v1163_v18 }
 0x1d3   : > { %3589 = vst [vmem:[#allocation21_spill] sm:$0xff] %v3217_v22  ;;  %v2335_v30 = vpop.eup %2334  ;;  %v3229_v22 = vmul.f32 0.5, %v785_v46  ;;  %v1040_v17 = vadd.f32 1.0, %v2333_v40  ;;  %v3242_v46 = vmul.f32 %v1039_v7, %v3156_v27  ;;  %v923_v15 = vmul.f32 0.70710677, %v676_v12  ;;  %1585 = vmatmul.mubr.bf16.gmra.mrb[36].mxu1 %v1165_v16 }
 0x1d4   : > { %v2337_v44 = vpop.eup %2336  ;;  %v1042_v61 = vadd.f32 1.0, %v2335_v30  ;;  %2350 = verf.f32 %v922_v52  ;;  %v925_v39 = vmul.f32 0.70710677, %v789_v49  ;;  %v678_v51 = vadd.f32 %v3099_v25, %v2975_v34 }
 0x1d5   : > { %v2339_v60 = vpop.eup %2338  ;;  %v3255_v27 = vmul.f32 %v1041_v59, %v3160_v9  ;;  %2352 = verf.f32 %v923_v15  ;;  %v791_v6 = vadd.f32 %v3108_v43, %v2977_v35  ;;  %v682_v45 = vadd.f32 %v3134_v8, %v2971_v32 }
 0x1d6   : > { %v3244_v26 = vpop.f32.mrb[28].mxu0  ;;  %v2341_v21 = vpop.eup %2340  ;;  %v3266_v14 = vmul.f32 %v1040_v17, %v3162_v10  ;;  %v1043_v30 = vadd.f32 1.0, %v2337_v44  ;;  %v1045_v52 = vadd.f32 1.0, %v2339_v60  ;;  %2354 = verf.f32 %v925_v39 }
 0x1d7   : > { %v3250_v57 = vpop.f32.mrb[28].mxu1  ;;  %v3252_v31 = vpop.f32.mrb[29].mxu0  ;;  %v3273_v43 = vmul.f32 %v1042_v61, %v3171_v3  ;;  %v1044_v59 = vadd.f32 1.0, %v2341_v21  ;;  %v924_v8 = vmul.f32 0.70710677, %v678_v51  ;;  %v795_v10 = vadd.f32 %v3136_v38, %v2973_v33 }
 0x1d8   : > { %v2343_v53 = vpop.eup %2342  ;;  %v3261_v7 = vpop.f32.mrb[29].mxu1  ;;  %v926_v18 = vmul.f32 0.70710677, %v791_v6  ;;  %v927_v17 = vmul.f32 0.70710677, %v682_v45  ;;  %v684_v60 = vadd.f32 %v3142_v62, %v2975_v34  ;;  %v797_v3 = vadd.f32 %v3144_v50, %v2977_v35 }
 0x1d9   : > { %v3263_v40 = vpop.f32.mrb[30].mxu0  ;;  %v2345_v25 = vpop.eup %2344  ;;  %v1046_v16 = vadd.f32 1.0, %v2343_v53  ;;  %2356 = verf.f32 %v924_v8  ;;  %v3286_v21 = vmul.f32 %v1043_v30, %v3186_v2  ;;  %v861_v39 = vmul.f32 0.5, %v789_v49 }
 0x1da   : > { %3590 = vst [vmem:[#allocation22_spill] sm:$0xff] %v3263_v40  ;;  %v3268_v9 = vpop.f32.mrb[30].mxu1  ;;  %v3270_v56 = vpop.f32.mrb[31].mxu0  ;;  %v1047_v15 = vadd.f32 1.0, %v2345_v25  ;;  %v3275_v40 = vmul.f32 0.5, %v676_v12  ;;  %v3289_v12 = vmul.f32 %v1045_v52, %v3197_v4  ;;  %v3292_v38 = vmul.f32 %v1044_v59, %v3199_v24 }
 0x1db   : > { %v3279_v44 = vpop.f32.mrb[31].mxu1  ;;  %v2347_v61 = vpop.eup %2346  ;;  %v929_v53 = vmul.f32 0.70710677, %v795_v10  ;;  %v3294_v25 = vmul.f32 0.5, %v678_v51  ;;  %2358 = verf.f32 %v926_v18  ;;  %v928_v8 = vmul.f32 0.70710677, %v684_v60 }
 0x1dc   : > { %v3297_v62 = vmul.f32 %v1046_v16, %v3211_v54  ;;  %v3300_v50 = vmul.f32 %v1047_v15, %v3213_v1  ;;  %v3302_v2 = vmul.f32 0.5, %v791_v6  ;;  %v3304_v30 = vmul.f32 0.5, %v682_v45  ;;  %v2349_v4 = vpop.eup %2348 }
 0x1dd   : > { %v1049_v49 = vadd.f32 1.0, %v2347_v61  ;;  %2360 = verf.f32 %v927_v17  ;;  %v930_v52 = vmul.f32 0.70710677, %v797_v3  ;;  %v1168_v24 = vpack.c.bf16 %v3220_v42, %v3176_v37 }
 0x1de   : > { %v2351_v51 = vpop.eup %2350  ;;  %2362 = verf.f32 %v929_v53  ;;  %v1170_v54 = vpack.c.bf16 %v3225_v58, %v3195_v63  ;;  %v686_v1 = vadd.f32 %v3149_v13, %v2971_v32  ;;  %v799_v6 = vadd.f32 %v3151_v29, %v2973_v33 }
 0x1df   : > { %v2353_v45 = vpop.eup %2352  ;;  %2364 = verf.f32 %v928_v8  ;;  %1495 = vmatprep.mubr.bf16.mxu0 %v1168_v24  ;;  %v1167_v59 = vpack.c.bf16 %v3206_v28, %v3154_v23  ;;  %v1169_v37 = vpack.c.bf16 %v3209_v5, %v3169_v36  ;;  %v688_v42 = vadd.f32 %v3158_v0, %v2975_v34 }
 0x1e0   : > { %v2355_v18 = vpop.eup %2354  ;;  %v1048_v63 = vadd.f32 1.0, %v2349_v4  ;;  %v3320_v58 = vmul.f32 0.5, %v795_v10  ;;  %2366 = verf.f32 %v930_v52  ;;  %1592 = vmatprep.mubr.bf16.mxu1 %v1170_v54  ;;  %v931_v13 = vmul.f32 0.70710677, %v686_v1 }
 0x1e1   : > { %v1050_v29 = vadd.f32 1.0, %v2351_v51  ;;  %v3322_v16 = vmul.f32 0.5, %v684_v60  ;;  %v933_v15 = vmul.f32 0.70710677, %v799_v6  ;;  %1496 = vmatmul.mubr.bf16.gmra.mrb[40].mxu0 %v1167_v59  ;;  %1593 = vmatmul.mubr.bf16.gmra.mrb[40].mxu1 %v1169_v37  ;;  %v932_v23 = vmul.f32 0.70710677, %v688_v42 }
 0x1e2   : > { %v3325_v28 = vmul.f32 %v1049_v49, %v3229_v22  ;;  %2368 = verf.f32 %v931_v13  ;;  %v801_v0 = vadd.f32 %v3166_v55, %v2977_v35  ;;  %v692_v36 = vadd.f32 %v3182_v19, %v2971_v32 }
 0x1e3   : > { %v2357_v5 = vpop.eup %2356  ;;  %v1051_v10 = vadd.f32 1.0, %v2353_v45  ;;  %v1053_v17 = vadd.f32 1.0, %v2355_v18  ;;  %2370 = verf.f32 %v933_v15  ;;  %v805_v60 = vadd.f32 %v3184_v47, %v2973_v33  ;;  %v3591_v18 = vld [vmem:[#allocation18_spill] sm:$0xff]  ;;  %v3592_v15 = vld [vmem:[#allocation19_spill] sm:$0xff] }
 0x1e4   : > { %v3333_v61 = vmul.f32 0.5, %v797_v3  ;;  %2372 = verf.f32 %v932_v23  ;;  %v934_v53 = vmul.f32 0.70710677, %v801_v0  ;;  %v694_v22 = vadd.f32 %v3190_v48, %v2975_v34 }
 0x1e5   : > { %v2359_v8 = vpop.eup %2358  ;;  %v3338_v55 = vmul.f32 %v1048_v63, %v3235_v20  ;;  %v3341_v19 = vmul.f32 %v1050_v29, %v3246_v11  ;;  %v3343_v4 = vmul.f32 0.5, %v686_v1  ;;  %v935_v49 = vmul.f32 0.70710677, %v692_v36 }
 0x1e6   : > { %v1052_v52 = vadd.f32 1.0, %v2357_v5  ;;  %v3345_v24 = vmul.f32 0.5, %v799_v6  ;;  %2374 = verf.f32 %v934_v53  ;;  %v937_v47 = vmul.f32 0.70710677, %v805_v60  ;;  %v3593_v5 = vld [vmem:[#allocation20_spill] sm:$0xff] }
 0x1e7   : > { %v2361_v3 = vpop.eup %2360  ;;  %v3348_v51 = vmul.f32 %v1051_v10, %v3275_v40  ;;  %v3350_v48 = vmul.f32 %v1053_v17, %v861_v39  ;;  %v3352_v54 = vmul.f32 0.5, %v688_v42  ;;  %2376 = verf.f32 %v935_v49 }
 0x1e8   : > { %v2363_v20 = vpop.eup %2362  ;;  %v1054_v11 = vadd.f32 1.0, %v2359_v8  ;;  %v3354_v45 = vmul.f32 0.5, %v801_v0  ;;  %v3356_v1 = vmul.f32 0.5, %v692_v36  ;;  %v936_v59 = vmul.f32 0.70710677, %v694_v22 }
 0x1e9   : > { %v2365_v6 = vpop.eup %2364  ;;  %v3358_v37 = vmul.f32 0.5, %v805_v60  ;;  %v807_v63 = vadd.f32 %v3591_v18, %v2977_v35  ;;  %v1172_v40 = vpack.c.bf16 %v3292_v38, %v3266_v14  ;;  %v1174_v39 = vpack.c.bf16 %v3297_v62, %v3273_v43 }
 0x1ea   : > { %v2367_v42 = vpop.eup %2366  ;;  %v3367_v13 = vmul.f32 %v1052_v52, %v3294_v25  ;;  %v1055_v29 = vadd.f32 1.0, %v2361_v3  ;;  %2378 = verf.f32 %v937_v47  ;;  %v696_v23 = vadd.f32 %v3592_v15, %v2971_v32 }
 0x1eb   : > { %v1057_v0 = vadd.f32 1.0, %v2363_v20  ;;  %v938_v36 = vmul.f32 0.70710677, %v807_v63  ;;  %1503 = vmatprep.mubr.bf16.mxu0 %v1172_v40  ;;  %1600 = vmatprep.mubr.bf16.mxu1 %v1174_v39  ;;  %v809_v10 = vadd.f32 %v3593_v5, %v2973_v33  ;;  %v1171_v14 = vpack.c.bf16 %v3286_v21, %v3242_v46  ;;  %v3594_v21 = vld [vmem:[#allocation21_spill] sm:$0xff] }
 0x1ec   : > { %v2369_v43 = vpop.eup %2368  ;;  %v1056_v38 = vadd.f32 1.0, %v2365_v6  ;;  %2380 = verf.f32 %v936_v59  ;;  %v939_v25 = vmul.f32 0.70710677, %v696_v23  ;;  %v1173_v62 = vpack.c.bf16 %v3289_v12, %v3255_v27 }
 0x1ed   : > { %v2371_v17 = vpop.eup %2370  ;;  %v1118_v60 = vmul.f32 %v1054_v11, %v3302_v2  ;;  %v1058_v53 = vadd.f32 1.0, %v2367_v42  ;;  %2382 = verf.f32 %v938_v36  ;;  %v941_v8 = vmul.f32 0.70710677, %v809_v10  ;;  %1504 = vmatmul.mubr.bf16.gmra.mrb[44].mxu0 %v1171_v14 }
 0x1ee   : > { %v2373_v49 = vpop.eup %2372  ;;  %v3378_v52 = vmul.f32 0.5, %v694_v22  ;;  %2384 = verf.f32 %v939_v25  ;;  %1601 = vmatmul.mubr.bf16.gmra.mrb[44].mxu1 %v1173_v62  ;;  %v698_v46 = vadd.f32 %v3215_v41, %v2975_v34  ;;  %v811_v47 = vadd.f32 %v3594_v21, %v2977_v35 }
 0x1ef   : > { %v3385_v27 = vmul.f32 %v1055_v29, %v3304_v30  ;;  %v3388_v12 = vmul.f32 %v1057_v0, %v3320_v58  ;;  %2386 = verf.f32 %v941_v8  ;;  %v3392_v2 = vadd.f32 %v3244_v26, %v2971_v32 }
 0x1f0   : > { %v2375_v22 = vpop.eup %2374  ;;  %v3395_v3 = vmul.f32 %v1056_v38, %v3322_v16  ;;  %v1059_v20 = vadd.f32 1.0, %v2369_v43  ;;  %v1061_v41 = vadd.f32 1.0, %v2371_v17  ;;  %v940_v11 = vmul.f32 0.70710677, %v698_v46 }
 0x1f1   : > { %v2377_v59 = vpop.eup %2376  ;;  %v3398_v6 = vmul.f32 %v1058_v53, %v3333_v61  ;;  %v1060_v30 = vadd.f32 1.0, %v2373_v49  ;;  %v3400_v18 = vmul.f32 0.5, %v807_v63  ;;  %v942_v58 = vmul.f32 0.70710677, %v811_v47 }
 0x1f2   : > { %v1062_v40 = vadd.f32 1.0, %v2375_v22  ;;  %v875_v39 = vmul.f32 0.5, %v696_v23  ;;  %2388 = verf.f32 %v940_v11  ;;  %v3404_v26 = vadd.f32 %v3250_v57, %v2973_v33 }
 0x1f3   : > { %v877_v16 = vmul.f32 0.5, %v809_v10  ;;  %2390 = verf.f32 %v942_v58  ;;  %v943_v42 = vmul.f32 0.70710677, %v3392_v2  ;;  %v3409_v29 = vadd.f32 %v3252_v31, %v2975_v34 }
 0x1f4   : > { %v2379_v61 = vpop.eup %2378  ;;  %v3412_v63 = vmul.f32 %v1059_v20, %v3343_v4  ;;  %v3415_v15 = vmul.f32 %v1061_v41, %v3345_v24  ;;  %v1063_v23 = vadd.f32 1.0, %v2377_v59  ;;  %v945_v0 = vmul.f32 0.70710677, %v3404_v26 }
 0x1f5   : > { %v1124_v57 = vmul.f32 %v1060_v30, %v3352_v54  ;;  %v876_v36 = vmul.f32 0.5, %v698_v46  ;;  %v878_v5 = vmul.f32 0.5, %v811_v47  ;;  %v944_v10 = vmul.f32 0.70710677, %v3409_v29  ;;  %v3595_v54 = vld [vmem:[#allocation22_spill] sm:$0xff] }
 0x1f6   : > { %v2381_v14 = vpop.eup %2380  ;;  %v1126_v31 = vmul.f32 %v1062_v40, %v3354_v45  ;;  %v3423_v43 = vadd.f32 %v3261_v7, %v2977_v35  ;;  %v1176_v4 = vpack.c.bf16 %v3367_v13, %v3338_v55  ;;  %v1178_v24 = vpack.c.bf16 %v1118_v60, %v3341_v19 }
 0x1f7   : > { %v2383_v38 = vpop.eup %2382  ;;  %v1065_v25 = vadd.f32 1.0, %v2379_v61  ;;  %2392 = verf.f32 %v943_v42  ;;  %v706_v62 = vadd.f32 %v3595_v54, %v2971_v32  ;;  %v3432_v17 = vadd.f32 %v3268_v9, %v2973_v33 }
 0x1f8   : > { %v2385_v45 = vpop.eup %2384  ;;  %v3435_v53 = vmul.f32 %v1063_v23, %v3356_v1  ;;  %2394 = verf.f32 %v945_v0  ;;  %v946_v7 = vmul.f32 0.70710677, %v3423_v43  ;;  %1511 = vmatprep.mubr.bf16.mxu0 %v1176_v4  ;;  %1608 = vmatprep.mubr.bf16.mxu1 %v1178_v24  ;;  %v1175_v55 = vpack.c.bf16 %v3348_v51, %v3300_v50 }
 0x1f9   : > { %v2387_v19 = vpop.eup %2386  ;;  %v1064_v13 = vadd.f32 1.0, %v2381_v14  ;;  %v1067_v60 = vadd.f32 1.0, %v2385_v45  ;;  %2396 = verf.f32 %v944_v10  ;;  %v947_v32 = vmul.f32 0.70710677, %v706_v62 }
 0x1fa   : > { %v1066_v8 = vadd.f32 1.0, %v2383_v38  ;;  %v1069_v33 = vadd.f32 1.0, %v2387_v19  ;;  %2398 = verf.f32 %v946_v7  ;;  %v949_v9 = vmul.f32 0.70710677, %v3432_v17  ;;  %1512 = vmatmul.mubr.bf16.gmra.mrb[48].mxu0 %v1175_v55 }
 0x1fb   : > { %v1131_v1 = vmul.f32 %v1067_v60, %v875_v39  ;;  %2400 = verf.f32 %v947_v32  ;;  %v1177_v49 = vpack.c.bf16 %v3350_v48, %v3325_v28  ;;  %v708_v46 = vadd.f32 %v3270_v56, %v2975_v34 }
 0x1fc   : > { %v2389_v50 = vpop.eup %2388  ;;  %v3445_v51 = vmul.f32 %v1069_v33, %v877_v16  ;;  %2402 = verf.f32 %v949_v9  ;;  %v821_v21 = vadd.f32 %v3279_v44, %v2977_v35  ;;  %v1180_v47 = vpack.c.bf16 %v1124_v57, %v3395_v3 }
 0x1fd   : > { %v2391_v22 = vpop.eup %2390  ;;  %v1129_v20 = vmul.f32 %v1065_v25, %v3358_v37  ;;  %v1068_v41 = vadd.f32 1.0, %v2389_v50  ;;  %1609 = vmatmul.mubr.bf16.gmra.mrb[48].mxu1 %v1177_v49  ;;  %v948_v11 = vmul.f32 0.70710677, %v708_v46  ;;  %v1182_v28 = vpack.c.bf16 %v1126_v31, %v3398_v6 }
 0x1fe   : > { %v1128_v48 = vmul.f32 %v1064_v13, %v3378_v52  ;;  %v1070_v34 = vadd.f32 1.0, %v2391_v22  ;;  %v950_v56 = vmul.f32 0.70710677, %v821_v21  ;;  %1519 = vmatprep.mubr.bf16.mxu0 %v1180_v47  ;;  %v1179_v59 = vpack.c.bf16 %v3412_v63, %v3385_v27 }
 0x1ff   : > { %v1130_v35 = vmul.f32 %v1066_v8, %v3400_v18  ;;  %v1132_v44 = vmul.f32 %v1068_v41, %v876_v36  ;;  %2404 = verf.f32 %v948_v11  ;;  %1616 = vmatprep.mubr.bf16.mxu1 %v1182_v28  ;;  %v1181_v37 = vpack.c.bf16 %v3415_v15, %v3388_v12 }
 0x200   : > { %v1134_v3 = vmul.f32 %v1070_v34, %v878_v5  ;;  %2406 = verf.f32 %v950_v56  ;;  %v1183_v6 = vpack.c.bf16 %v1131_v1, %v3435_v53  ;;  %v1185_v52 = vpack.c.bf16 %v3445_v51, %v1129_v20  ;;  %v3465_v51 = vld [vmem:[#allocation11] ss:$0 sm:$0xff] }
 0x201   : > { %v2393_v30 = vpop.eup %2392  ;;  %v1184_v58 = vpack.c.bf16 %v1132_v44, %v1128_v48  ;;  %v879_v12 = vmul.f32 0.5, %v3392_v2  ;;  %v883_v15 = vmul.f32 0.5, %v706_v62  ;;  %v881_v0 = vmul.f32 0.5, %v3404_v26 }
 0x202   : > { %v2395_v40 = vpop.eup %2394  ;;  %1520 = vmatmul.mubr.bf16.gmra.mrb[52].mxu0 %v1179_v59  ;;  %v1186_v39 = vpack.c.bf16 %v1134_v3, %v1130_v35  ;;  %v1071_v16 = vadd.f32 1.0, %v2393_v30  ;;  %v885_v57 = vmul.f32 0.5, %v3432_v17  ;;  %v880_v54 = vmul.f32 0.5, %v3409_v29 }
 0x203   : > { %v2397_v27 = vpop.eup %2396  ;;  %1527 = vmatprep.mubr.bf16.mxu0 %v1184_v58  ;;  %v1073_v61 = vadd.f32 1.0, %v2395_v40  ;;  %v884_v45 = vmul.f32 0.5, %v708_v46  ;;  %v882_v53 = vmul.f32 0.5, %v3423_v43  ;;  %v886_v26 = vmul.f32 0.5, %v821_v21 }
 0x204   : > { %v2399_v18 = vpop.eup %2398  ;;  %v1135_v5 = vmul.f32 %v1071_v16, %v879_v12  ;;  %v1072_v10 = vadd.f32 1.0, %v2397_v27 }
 0x205   : > { %v2401_v42 = vpop.eup %2400  ;;  %1617 = vmatmul.mubr.bf16.gmra.mrb[52].mxu1 %v1181_v37  ;;  %v1137_v4 = vmul.f32 %v1073_v61, %v881_v0  ;;  %v1074_v24 = vadd.f32 1.0, %v2399_v18 }
 0x206   : > { %v2403_v63 = vpop.eup %2402  ;;  %v1075_v23 = vadd.f32 1.0, %v2401_v42  ;;  %1624 = vmatprep.mubr.bf16.mxu1 %v1186_v39  ;;  %v1136_v55 = vmul.f32 %v1072_v10, %v880_v54 }
 0x207   : > { %v1077_v36 = vadd.f32 1.0, %v2403_v63  ;;  %v1138_v13 = vmul.f32 %v1074_v24, %v882_v53 }
 0x208   : > { %v1139_v14 = vmul.f32 %v1075_v23, %v883_v15 }
 0x209   : > { %v2405_v31 = vpop.eup %2404  ;;  %v1141_v38 = vmul.f32 %v1077_v36, %v885_v57 }
 0x20a   : > { %v2407_v25 = vpop.eup %2406  ;;  %v1076_v2 = vadd.f32 1.0, %v2405_v31  ;;  %1528 = vmatmul.mubr.bf16.gmra.mrb[56].mxu0 %v1183_v6  ;;  %v1187_v62 = vpack.c.bf16 %v1139_v14, %v1135_v5 }
 0x20b   : > { %v1078_v7 = vadd.f32 1.0, %v2407_v25  ;;  %v1189_v17 = vpack.c.bf16 %v1141_v38, %v1137_v4 }
 0x20c   : > { %v1140_v19 = vmul.f32 %v1076_v2, %v884_v45 }
 0x20d   : > { %v1142_v60 = vmul.f32 %v1078_v7, %v886_v26  ;;  %1625 = vmatmul.mubr.bf16.gmra.mrb[56].mxu1 %v1185_v52 }
 0x20e   : > { %v1188_v32 = vpack.c.bf16 %v1140_v19, %v1136_v55 }
 0x20f   : > { %v1190_v8 = vpack.c.bf16 %v1142_v60, %v1138_v13 }
 0x210   : > { %1535 = vmatprep.mubr.bf16.mxu0 %v1188_v32 }
 0x211   : > { %1632 = vmatprep.mubr.bf16.mxu1 %v1190_v8 }
 0x212   : > { %1536 = vmatmul.mubr.bf16.gmra.mrb[60].mxu0 %v1187_v62 }
 0x215   : > { %1633 = vmatmul.mubr.bf16.gmra.mrb[60].mxu1 %v1189_v17 }
 0x296   : > { %v1976_v29 = vpop.f32.mrb[32].mxu0  ;;  %v2040_v33 = vpop.f32.mrb[32].mxu1 }
 0x297   : > { %v1977_v9 = vpop.f32.mrb[33].mxu0  ;;  %v2041_v1 = vpop.f32.mrb[33].mxu1 }
 0x298   : > { %v1978_v43 = vadd.f32 %v1977_v9, %v1976_v29  ;;  %v2042_v49 = vadd.f32 %v2041_v1, %v2040_v33  ;;  %v1979_v46 = vpop.f32.mrb[34].mxu0  ;;  %v2043_v50 = vpop.f32.mrb[34].mxu1 }
 0x299   : > { %v1980_v21 = vpop.f32.mrb[35].mxu0  ;;  %v2044_v47 = vpop.f32.mrb[35].mxu1 }
 0x29a   : > { %v1579_v22 = vadd.f32 %v2042_v49, %v1978_v43  ;;  %v1981_v20 = vadd.f32 %v1980_v21, %v1979_v46  ;;  %v2045_v41 = vadd.f32 %v2044_v47, %v2043_v50 }
 0x29c   : > { %v1699_v11 = vadd.f32 %v3465_v51, %v1579_v22  ;;  %v1582_v28 = vadd.f32 %v2045_v41, %v1981_v20 }
 0x29e   : > { %1715 = vst [vmem:[%s3470_s26] sm:$0xff] %v1699_v11  ;;  %v1700_v48 = vadd.f32 %v3465_v51, %v1582_v28 }
 0x2a0   : > { %1716 = vst [vmem:[%s3470_s26 + $0x8] sm:$0xff] %v1700_v48 }
 0x2a5   : > { %v1982_v34 = vpop.f32.mrb[36].mxu0 }
 0x2a6   : > { %v2046_v56 = vpop.f32.mrb[36].mxu1  ;;  %v1983_v59 = vpop.f32.mrb[37].mxu0 }
 0x2a7   : > { %v2047_v35 = vpop.f32.mrb[37].mxu1  ;;  %v1984_v44 = vadd.f32 %v1983_v59, %v1982_v34  ;;  %v1985_v3 = vpop.f32.mrb[38].mxu0 }
 0x2a8   : > { %v2048_v37 = vadd.f32 %v2047_v35, %v2046_v56  ;;  %v2049_v6 = vpop.f32.mrb[38].mxu1  ;;  %v1986_v52 = vpop.f32.mrb[39].mxu0 }
 0x2a9   : > { %v2050_v30 = vpop.f32.mrb[39].mxu1  ;;  %v1987_v40 = vadd.f32 %v1986_v52, %v1985_v3 }
 0x2aa   : > { %v1587_v58 = vadd.f32 %v2048_v37, %v1984_v44  ;;  %v2051_v39 = vadd.f32 %v2050_v30, %v2049_v6 }
 0x2ac   : > { %v1701_v27 = vadd.f32 %v3465_v51, %v1587_v58  ;;  %v1590_v18 = vadd.f32 %v2051_v39, %v1987_v40 }
 0x2ae   : > { %1717 = vst [vmem:[%s3470_s26 + $0x10] sm:$0xff] %v1701_v27  ;;  %v1702_v16 = vadd.f32 %v3465_v51, %v1590_v18 }
 0x2b0   : > { %1718 = vst [vmem:[%s3470_s26 + $0x18] sm:$0xff] %v1702_v16 }
 0x2b4   : > { %v1988_v42 = vpop.f32.mrb[40].mxu0  ;;  %v2052_v61 = vpop.f32.mrb[40].mxu1 }
 0x2b5   : > { %v1989_v63 = vpop.f32.mrb[41].mxu0  ;;  %v2053_v12 = vpop.f32.mrb[41].mxu1 }
 0x2b6   : > { %v1990_v15 = vadd.f32 %v1989_v63, %v1988_v42  ;;  %v2054_v23 = vadd.f32 %v2053_v12, %v2052_v61  ;;  %v1991_v0 = vpop.f32.mrb[42].mxu0  ;;  %v2055_v57 = vpop.f32.mrb[42].mxu1 }
 0x2b7   : > { %v1992_v36 = vpop.f32.mrb[43].mxu0  ;;  %v2056_v5 = vpop.f32.mrb[43].mxu1 }
 0x2b8   : > { %v1595_v10 = vadd.f32 %v2054_v23, %v1990_v15  ;;  %v1993_v14 = vadd.f32 %v1992_v36, %v1991_v0  ;;  %v2057_v31 = vadd.f32 %v2056_v5, %v2055_v57 }
 0x2ba   : > { %v1703_v4 = vadd.f32 %v3465_v51, %v1595_v10  ;;  %v1598_v24 = vadd.f32 %v2057_v31, %v1993_v14 }
 0x2bc   : > { %1719 = vst [vmem:[%s3470_s26 + $0x20] sm:$0xff] %v1703_v4  ;;  %v1704_v38 = vadd.f32 %v3465_v51, %v1598_v24 }
 0x2be   : > { %1720 = vst [vmem:[%s3470_s26 + $0x28] sm:$0xff] %v1704_v38 }
 0x2c0   : > { %v1994_v25 = vpop.f32.mrb[44].mxu0 }
 0x2c1   : > { %v2058_v54 = vpop.f32.mrb[44].mxu1  ;;  %v1995_v45 = vpop.f32.mrb[45].mxu0 }
 0x2c2   : > { %v1996_v2 = vadd.f32 %v1995_v45, %v1994_v25  ;;  %v2059_v62 = vpop.f32.mrb[45].mxu1  ;;  %v1997_v53 = vpop.f32.mrb[46].mxu0 }
 0x2c3   : > { %v2060_v26 = vadd.f32 %v2059_v62, %v2058_v54  ;;  %v2061_v7 = vpop.f32.mrb[46].mxu1  ;;  %v1998_v17 = vpop.f32.mrb[47].mxu0 }
 0x2c4   : > { %v1999_v55 = vadd.f32 %v1998_v17, %v1997_v53  ;;  %v2062_v19 = vpop.f32.mrb[47].mxu1 }
 0x2c5   : > { %v1603_v13 = vadd.f32 %v2060_v26, %v1996_v2  ;;  %v2063_v60 = vadd.f32 %v2062_v19, %v2061_v7 }
 0x2c7   : > { %v1705_v32 = vadd.f32 %v3465_v51, %v1603_v13  ;;  %v1606_v8 = vadd.f32 %v2063_v60, %v1999_v55 }
 0x2c9   : > { %1721 = vst [vmem:[%s3470_s26 + $0x30] sm:$0xff] %v1705_v32  ;;  %v1706_v29 = vadd.f32 %v3465_v51, %v1606_v8 }
 0x2cb   : > { %1722 = vst [vmem:[%s3470_s26 + $0x38] sm:$0xff] %v1706_v29 }
 0x2cd   : > { %v2000_v33 = vpop.f32.mrb[48].mxu0 }
 0x2ce   : > { %v2001_v9 = vpop.f32.mrb[49].mxu0 }
 0x2cf   : > { %v2002_v1 = vadd.f32 %v2001_v9, %v2000_v33  ;;  %v2003_v43 = vpop.f32.mrb[50].mxu0 }
 0x2d0   : > { %v2064_v49 = vpop.f32.mrb[48].mxu1  ;;  %v2004_v46 = vpop.f32.mrb[51].mxu0 }
 0x2d1   : > { %v2065_v50 = vpop.f32.mrb[49].mxu1  ;;  %v2005_v21 = vadd.f32 %v2004_v46, %v2003_v43 }
 0x2d2   : > { %v2066_v47 = vadd.f32 %v2065_v50, %v2064_v49  ;;  %v2067_v22 = vpop.f32.mrb[50].mxu1 }
 0x2d3   : > { %v2068_v20 = vpop.f32.mrb[51].mxu1 }
 0x2d4   : > { %v1611_v41 = vadd.f32 %v2066_v47, %v2002_v1  ;;  %v2069_v11 = vadd.f32 %v2068_v20, %v2067_v22 }
 0x2d5   : > { %v2006_v28 = vpop.f32.mrb[52].mxu0 }
 0x2d6   : > { %v1707_v48 = vadd.f32 %v3465_v51, %v1611_v41  ;;  %v1614_v34 = vadd.f32 %v2069_v11, %v2005_v21  ;;  %v2007_v56 = vpop.f32.mrb[53].mxu0 }
 0x2d7   : > { %v2008_v59 = vadd.f32 %v2007_v56, %v2006_v28  ;;  %v2009_v35 = vpop.f32.mrb[54].mxu0 }
 0x2d8   : > { %1723 = vst [vmem:[%s3470_s26 + $0x40] sm:$0xff] %v1707_v48  ;;  %v1708_v44 = vadd.f32 %v3465_v51, %v1614_v34  ;;  %v2070_v37 = vpop.f32.mrb[52].mxu1  ;;  %v2010_v3 = vpop.f32.mrb[55].mxu0 }
 0x2d9   : > { %v2071_v6 = vpop.f32.mrb[53].mxu1  ;;  %v2011_v52 = vadd.f32 %v2010_v3, %v2009_v35 }
 0x2da   : > { %1724 = vst [vmem:[%s3470_s26 + $0x48] sm:$0xff] %v1708_v44  ;;  %v2072_v30 = vadd.f32 %v2071_v6, %v2070_v37  ;;  %v2073_v58 = vpop.f32.mrb[54].mxu1 }
 0x2db   : > { %v2074_v40 = vpop.f32.mrb[55].mxu1 }
 0x2dc   : > { %v1619_v39 = vadd.f32 %v2072_v30, %v2008_v59  ;;  %v2075_v27 = vadd.f32 %v2074_v40, %v2073_v58 }
 0x2dd   : > { %v2012_v18 = vpop.f32.mrb[56].mxu0 }
 0x2de   : > { %v1709_v16 = vadd.f32 %v3465_v51, %v1619_v39  ;;  %v1622_v42 = vadd.f32 %v2075_v27, %v2011_v52  ;;  %v2013_v61 = vpop.f32.mrb[57].mxu0 }
 0x2df   : > { %v2014_v63 = vadd.f32 %v2013_v61, %v2012_v18  ;;  %v2015_v12 = vpop.f32.mrb[58].mxu0 }
 0x2e0   : > { %1725 = vst [vmem:[%s3470_s26 + $0x50] sm:$0xff] %v1709_v16  ;;  %v1710_v15 = vadd.f32 %v3465_v51, %v1622_v42  ;;  %v2076_v23 = vpop.f32.mrb[56].mxu1  ;;  %v2016_v0 = vpop.f32.mrb[59].mxu0 }
 0x2e1   : > { %v2077_v57 = vpop.f32.mrb[57].mxu1  ;;  %v2017_v36 = vadd.f32 %v2016_v0, %v2015_v12 }
 0x2e2   : > { %1726 = vst [vmem:[%s3470_s26 + $0x58] sm:$0xff] %v1710_v15  ;;  %v2078_v5 = vadd.f32 %v2077_v57, %v2076_v23  ;;  %v2079_v10 = vpop.f32.mrb[58].mxu1 }
 0x2e3   : > { %v2080_v14 = vpop.f32.mrb[59].mxu1 }
 0x2e4   : > { %v1627_v31 = vadd.f32 %v2078_v5, %v2014_v63  ;;  %v2081_v4 = vadd.f32 %v2080_v14, %v2079_v10 }
 0x2e5   : > { %v2018_v24 = vpop.f32.mrb[60].mxu0 }
 0x2e6   : > { %v1711_v38 = vadd.f32 %v3465_v51, %v1627_v31  ;;  %v1630_v25 = vadd.f32 %v2081_v4, %v2017_v36  ;;  %v2019_v54 = vpop.f32.mrb[61].mxu0 }
 0x2e7   : > { %v2020_v45 = vadd.f32 %v2019_v54, %v2018_v24  ;;  %v2021_v2 = vpop.f32.mrb[62].mxu0 }
 0x2e8   : > { %1727 = vst [vmem:[%s3470_s26 + $0x60] sm:$0xff] %v1711_v38  ;;  %v1712_v62 = vadd.f32 %v3465_v51, %v1630_v25  ;;  %v2082_v53 = vpop.f32.mrb[60].mxu1  ;;  %v2022_v26 = vpop.f32.mrb[63].mxu0 }
 0x2e9   : > { %v2083_v7 = vpop.f32.mrb[61].mxu1  ;;  %v2023_v17 = vadd.f32 %v2022_v26, %v2021_v2 }
 0x2ea   : > { %1728 = vst [vmem:[%s3470_s26 + $0x68] sm:$0xff] %v1712_v62  ;;  %v2084_v55 = vadd.f32 %v2083_v7, %v2082_v53  ;;  %v2085_v19 = vpop.f32.mrb[62].mxu1 }
 0x2eb   : > { %v2086_v13 = vpop.f32.mrb[63].mxu1 }
 0x2ec   : > { %v1635_v60 = vadd.f32 %v2084_v55, %v2020_v45  ;;  %v2087_v32 = vadd.f32 %v2086_v13, %v2085_v19 }
 0x2ee   : > { %v1713_v8 = vadd.f32 %v3465_v51, %v1635_v60  ;;  %v1638_v29 = vadd.f32 %v2087_v32, %v2023_v17 }
 0x2f0   : > { %1729 = vst [vmem:[%s3470_s26 + $0x70] sm:$0xff] %v1713_v8  ;;  %v1714_v33 = vadd.f32 %v3465_v51, %v1638_v29 }
 0x2f2   : > { %1730 = vst [vmem:[%s3470_s26 + $0x78] sm:$0xff] %v1714_v33 }
 0x2f3   : > { %2563 = shalt.err (!%p2560_p0)
}
 0x2f4   : > { %s2564_s27 = scalar_lea.hbm %s3505_s13, 2048  ;;  %s2568_s29 = scalar_lea.hbm %s3564_s5, 4096 }
 0x2f5   : > { %p2565_p4 = scmp.ne.s32.totalorder %s3505_s13, %s2564_s27  ;;  %p2569_p12 = scmp.lt.u32.totalorder %s3505_s13, %s3564_s5 }
 0x2f6   : > { %p2570_p1 = scmp.lt.u32.totalorder %s2568_s29, %s2564_s27  ;;  %p2572_p10 = scmp.lt.u32.totalorder %s2564_s27, %s3505_s13 }
 0x2f7   : > { %p2566_p13 = pnand %p2565_p4, %p2864_p5 }
 0x2f8   : > { %p2571_p11 = por %p2570_p1, %p2569_p12 }
 0x2f9   : > { %p2567_p6 = pneg %p2566_p13 }
 0x2fa   : > { %p2573_p3 = por %p2572_p10, %p2571_p11 }
 0x2fc   : > { %p2574_p2 = pnand %p2573_p3, %p2567_p6 }
 0x2fe   : > { %2577 = shalt.err (!%p2574_p2)
}
 0x2ff   : > { %s2655_s26 = smov 128   ;;  %s2656_s28 = smov 8  }
 0x300   : > { %2106 = dma.vmem_to_hbm [thread:$0]  (%p2864_p5), %s3507_s30, 2048, %s3505_s13, %s1732_s9, %s2655_s26, %s2655_s26, %s2656_s28  }
 0x301 PF: > { %s3596_s25 = sld [smem:[#allocation17_spill]]  ;;  %s1760_s7 = sand.u32 1, %s2620_s18  }
 0x302   : > { %p3598_p7 = scmp.ge.s32.totalorder %s2640_s23, 2  ;;  %s1761_s21 = scalar_lea.sflag [#allocation5], %s1760_s7 }
 0x307   : > { %p3597_p8 = scmp.ne.s32.totalorder %s3596_s25, 0 }
 0x309   : > { %p2126_p9 = pnand %p3598_p7, %p3597_p8 }
 0x30b   : > { %2615 = dma.done.wait (!%p2126_p9), %s1761_s21, 2048  }
 0x30c   : > { %2617 = vsyncadd (!%p2126_p9), %s1761_s21, 4294965248  ;;  %s23_s23 = sadd.s32 1, %s2640_s23   ;;  %s3599_s18 = smov %s2624_s19 }
 0x30d   : > { %p20_p0 = scmp.ge.s32.totalorder %s23_s23, 4   ;;  %s3600_s19 = smov %s2628_s20 }
 0x30e   : > { %s3601_s20 = smov %s2873_s14  ;;  %s3602_s21 = smov %s2636_s22 }
 0x30f   : > { %s3603_s22 = smov %s3605_s16  ;;  %22 = sbr.rel (!%p20_p0) target bundleno = 10 (0xa), region = 112 }
 0x316   :  { %1766 = vsyncpa [#allocation4], 1 }
 0x317   :  { %1768 = vsyncpa [#allocation4 + $0x1], 1 }
 0x318   :  { %1769 = vsyncpa [#allocation7], 1 }
 0x319   :  { %1770 = vsyncpa [#allocation10], 1 }
 0x31a   :  { %1771 = vsyncpa [#allocation5], 1 }
 0x31b   :  { %1773 = vsyncpa [#allocation5 + $0x1], 1 }

</bundles_post_ra>
